<compile_context>
chip_gen: v6e
topology: v6e:2x2x1
jax: 0.10.0
libtpu: 0.0.40
codegen_flags: <defaults>
</compile_context>

<pallas_src>
import math
import functools

import jax
import jax.numpy as jnp
from jax.experimental import pallas as pl
from jax.experimental.pallas import tpu as pltpu


# --------------------------------------------------------------------------
# Kernel 1: cluster assignment + BN + softmax + per-batch pooling + L2 norm
#           + hidden projection.
# --------------------------------------------------------------------------
def _pool_project_kernel(*refs, batch, samples, add_batch_norm):
    if add_batch_norm:
        x_ref, cw_ref, g_ref, b_ref, hw_ref, o_ref = refs
    else:
        x_ref, cw_ref, bias_ref, hw_ref, o_ref = refs

    x = x_ref[...]                                   # native dtype to the MXU
    act = jnp.dot(x, cw_ref[...], preferred_element_type=jnp.float32)  # (N, C)

    if add_batch_norm:
        # BatchNorm1d training mode: biased variance over the N rows, eps=1e-5.
        mean = jnp.mean(act, axis=0, keepdims=True)
        cen = act - mean
        var = jnp.mean(cen * cen, axis=0, keepdims=True)
        act = cen * jax.lax.rsqrt(var + 1e-5) * g_ref[...] + b_ref[...]
    else:
        act = act + bias_ref[...]

    # Softmax over the cluster axis.
    act = act - jnp.max(act, axis=-1, keepdims=True)
    p = jnp.exp(act)
    p = p / jnp.sum(p, axis=-1, keepdims=True)       # (N, C)

    # Per-batch sum over the samples axis, done as a (B, N) segment matrix
    # matmul on the MXU (avoids an in-kernel 3-D reshape/reduce).
    n = batch * samples
    col = jax.lax.broadcasted_iota(jnp.int32, (batch, n), 1)
    row = jax.lax.broadcasted_iota(jnp.int32, (batch, n), 0)
    seg = jnp.where((col >= row * samples) & (col < (row + 1) * samples),
                    1.0, 0.0).astype(jnp.float32)
    bof = jnp.dot(seg, p, preferred_element_type=jnp.float32)       # (B, C)

    # F.normalize(bof, dim=1, p=2): divide by max(||.||_2, eps).
    norm = jnp.sqrt(jnp.sum(bof * bof, axis=-1, keepdims=True))
    bof = bof / jnp.maximum(norm, 1e-12)

    # Hidden projection (C, O) — weight fed in its native dtype.
    bof2 = jnp.dot(bof.astype(hw_ref.dtype), hw_ref[...],
                   preferred_element_type=jnp.float32)              # (B, O)
    o_ref[...] = bof2.astype(o_ref.dtype)


# --------------------------------------------------------------------------
# Kernel 2: context gating, tiled over the output-feature axis.
# --------------------------------------------------------------------------
def _gating_kernel(*refs, add_batch_norm):
    if add_batch_norm:
        x_ref, w_ref, g_ref, b_ref, xj_ref, o_ref = refs
    else:
        x_ref, w_ref, bias_ref, xj_ref, o_ref = refs

    # (B, D) resident x  @  (D, TILE_N) streamed weight tile.
    gates = jnp.dot(x_ref[...], w_ref[...], preferred_element_type=jnp.float32)

    if add_batch_norm:
        mean = jnp.mean(gates, axis=0, keepdims=True)
        cen = gates - mean
        var = jnp.mean(cen * cen, axis=0, keepdims=True)
        gates = cen * jax.lax.rsqrt(var + 1e-5) * g_ref[...] + b_ref[...]
    else:
        gates = gates + bias_ref[...]

    gates = jax.nn.sigmoid(gates)
    xj = xj_ref[...]                                  # original-dtype column tile
    o_ref[...] = (xj * gates.astype(xj.dtype)).astype(o_ref.dtype)


# --------------------------------------------------------------------------
# Host-side helpers.
# --------------------------------------------------------------------------
def _pick_gating_tile(dim):
    # Weight-streaming tile along the gated-feature axis:
    #  - multiple of 128 (lane width); >=256 preferred for the 256-wide
    #    v6e/v7x MXU, and within the 128-512 sweet spot for v5e,
    #  - at least 2 tiles when the dim allows, so the v7x megacore can split
    #    the "parallel" grid axis across its two TensorCores.
    if dim % 128 != 0 or dim <= 256:
        return dim                       # tiny / ragged dim: single full tile
    for t in (512, 384, 256, 128):
        if dim % t == 0 and dim // t >= 2:
            return t
    return dim


def _vmem_limit(block_bytes):
    # Double-buffered blocks + ~25% headroom; keep within every generation's
    # physical VMEM (v7x has only 64 MiB per TensorCore).
    total = int(2 * block_bytes * 1.25) + (4 << 20)
    return min(max(total, 32 << 20), 48 << 20)


@functools.partial(jax.jit, static_argnames=("add_batch_norm", "gating"))
def soft_dbow(x, cluster_weights, hidden1_weights,
              cluster_gamma=None, cluster_beta=None, cluster_biases=None,
              gating_weights=None, gating_gamma=None, gating_beta=None,
              gating_biases=None, *, add_batch_norm=True, gating=True):
    """x: (B, M, F).  Returns (B, output_dim)."""
    B, M, F = x.shape
    N = B * M
    C = cluster_weights.shape[1]
    O = hidden1_weights.shape[1]
    x2d = x.reshape(N, F)

    full = lambda shape: pl.BlockSpec(shape, lambda: (0,) * len(shape))

    # ---- Kernel 1: pool + project (single block; shapes are small) --------
    if add_batch_norm:
        pool_inputs = (x2d, cluster_weights, cluster_gamma.reshape(1, C),
                       cluster_beta.reshape(1, C), hidden1_weights)
        pool_specs = [full((N, F)), full((F, C)), full((1, C)), full((1, C)),
                      full((C, O))]
    else:
        pool_inputs = (x2d, cluster_weights, cluster_biases.reshape(1, C),
                       hidden1_weights)
        pool_specs = [full((N, F)), full((F, C)), full((1, C)), full((C, O))]

    pool_bytes = 4 * (N * F + F * C + 2 * C + C * O + B * O)
    bof = pl.pallas_call(
        functools.partial(_pool_project_kernel, batch=B, samples=M,
                          add_batch_norm=add_batch_norm),
        out_shape=jax.ShapeDtypeStruct((B, O), x.dtype),
        in_specs=pool_specs,
        out_specs=full((B, O)),
        compiler_params=pltpu.CompilerParams(
            vmem_limit_bytes=_vmem_limit(pool_bytes)),
    )(*pool_inputs)

    if not gating:
        return bof

    # ---- Kernel 2: context gating, grid over output features --------------
    tile_n = _pick_gating_tile(O)
    grid = (O // tile_n,)

    x_resident = pl.BlockSpec((B, O), lambda j: (0, 0))        # stays in VMEM
    w_tile = pl.BlockSpec((O, tile_n), lambda j: (0, j))       # streamed weight
    vec_tile = pl.BlockSpec((1, tile_n), lambda j: (0, j))
    col_tile = pl.BlockSpec((B, tile_n), lambda j: (0, j))

    if add_batch_norm:
        gate_inputs = (bof, gating_weights, gating_gamma.reshape(1, O),
                       gating_beta.reshape(1, O), bof)
        gate_specs = [x_resident, w_tile, vec_tile, vec_tile, col_tile]
    else:
        gate_inputs = (bof, gating_weights, gating_biases.reshape(1, O), bof)
        gate_specs = [x_resident, w_tile, vec_tile, col_tile]

    gate_bytes = 4 * (B * O + O * tile_n + 2 * tile_n + 2 * B * tile_n)
    out = pl.pallas_call(
        functools.partial(_gating_kernel, add_batch_norm=add_batch_norm),
        out_shape=jax.ShapeDtypeStruct((B, O), x.dtype),
        grid=grid,
        in_specs=gate_specs,
        out_specs=col_tile,
        compiler_params=pltpu.CompilerParams(
            dimension_semantics=("parallel",),
            vmem_limit_bytes=_vmem_limit(gate_bytes)),
    )(*gate_inputs)
    return out


# --------------------------------------------------------------------------
# Pure-JAX reference of the PyTorch forward (training-mode BN).
# --------------------------------------------------------------------------
def _reference(x, cw, cg, cb, cbias, hw, gw, gg, gb, gbias,
               *, add_batch_norm=True, gating=True):
    B, M, F = x.shape
    ri = x.reshape(-1, F).astype(jnp.float32)
    act = ri @ cw.astype(jnp.float32)
    if add_batch_norm:
        mean = act.mean(0, keepdims=True)
        var = ((act - mean) ** 2).mean(0, keepdims=True)
        act = (act - mean) / jnp.sqrt(var + 1e-5) * cg + cb
    else:
        act = act + cbias
    act = jax.nn.softmax(act, axis=-1)
    bof = act.reshape(B, M, -1).sum(1)
    bof = bof / jnp.maximum(jnp.linalg.norm(bof, axis=1, keepdims=True), 1e-12)
    bof = bof @ hw.astype(jnp.float32)
    if gating:
        gates = bof @ gw.astype(jnp.float32)
        if add_batch_norm:
            mean = gates.mean(0, keepdims=True)
            var = ((gates - mean) ** 2).mean(0, keepdims=True)
            gates = (gates - mean) / jnp.sqrt(var + 1e-5) * gg + gb
        else:
            gates = gates + gbias
        bof = bof * jax.nn.sigmoid(gates)
    return bof


if __name__ == "__main__":
    # Small shapes consistent with the module:
    #   batch=8, max_samples=4, feature_size=64, cluster_size=128, output_dim=512
    B, M, F, C, O = 8, 4, 64, 128, 512

    key = jax.random.PRNGKey(0)
    k = jax.random.split(key, 8)
    x = jax.random.normal(k[0], (B, M, F), dtype=jnp.float32)

    # Parameter init mirroring the PyTorch __init__ (N(0, 1/sqrt(fan)) weights).
    cluster_weights = jax.random.normal(k[1], (F, C), jnp.float32) / math.sqrt(F)
    hidden1_weights = jax.random.normal(k[2], (C, O), jnp.float32) / math.sqrt(C)
    gating_weights = jax.random.normal(k[3], (O, O), jnp.float32) / math.sqrt(O)
    cluster_biases = jax.random.normal(k[4], (C,), jnp.float32) / math.sqrt(F)
    gating_biases = jax.random.normal(k[5], (O,), jnp.float32) / math.sqrt(O)
    # BN affine params (perturbed from the 1/0 init so the gamma/beta path is
    # actually exercised; semantics identical).
    cluster_gamma = 1.0 + 0.1 * jax.random.normal(k[6], (C,), jnp.float32)
    cluster_beta = 0.1 * jax.random.normal(k[6], (C,), jnp.float32)
    gating_gamma = 1.0 + 0.1 * jax.random.normal(k[7], (O,), jnp.float32)
    gating_beta = 0.1 * jax.random.normal(k[7], (O,), jnp.float32)

    # BatchNorm path (module default).
    out_bn = soft_dbow(x, cluster_weights, hidden1_weights,
                       cluster_gamma=cluster_gamma, cluster_beta=cluster_beta,
                       gating_weights=gating_weights,
                       gating_gamma=gating_gamma, gating_beta=gating_beta,
                       add_batch_norm=True, gating=True)
    jax.block_until_ready(out_bn)
    ref_bn = _reference(x, cluster_weights, cluster_gamma, cluster_beta,
                        cluster_biases, hidden1_weights, gating_weights,
                        gating_gamma, gating_beta, gating_biases,
                        add_batch_norm=True, gating=True)
    assert jnp.allclose(out_bn, ref_bn, atol=2e-5, rtol=2e-5), \
        float(jnp.max(jnp.abs(out_bn - ref_bn)))

    # Bias path (add_batch_norm=False).
    out_bias = soft_dbow(x, cluster_weights, hidden1_weights,
                         cluster_biases=cluster_biases,
                         gating_weights=gating_weights,
                         gating_biases=gating_biases,
                         add_batch_norm=False, gating=True)
    jax.block_until_ready(out_bias)
    ref_bias = _reference(x, cluster_weights, cluster_gamma, cluster_beta,
                          cluster_biases, hidden1_weights, gating_weights,
                          gating_gamma, gating_beta, gating_biases,
                          add_batch_norm=False, gating=True)
    assert jnp.allclose(out_bias, ref_bias, atol=2e-5, rtol=2e-5), \
        float(jnp.max(jnp.abs(out_bias - ref_bias)))

    print("KERNEL_OK")
</pallas_src>

<mosaic_0001>
module attributes {stable_mosaic.version = 11 : i64} {
  func.func @_gating_kernel(%arg0: i32, %arg1: memref<8x512xf32, #tpu.memory_space<vmem>>, %arg2: memref<512x256xf32, #tpu.memory_space<vmem>>, %arg3: memref<1x256xf32, #tpu.memory_space<vmem>>, %arg4: memref<1x256xf32, #tpu.memory_space<vmem>>, %arg5: memref<8x256xf32, #tpu.memory_space<vmem>>, %arg6: memref<8x256xf32, #tpu.memory_space<vmem>>) attributes {dimension_semantics = [#tpu.dimension_semantics<parallel>], iteration_bounds = array<i64: 2>, scalar_prefetch = 0 : i64, scratch_operands = 0 : i64, tpu.core_type = #tpu.core_type<tc>, window_params = [{pipeline_mode = #tpu.pipeline_mode<synchronous>, transform_indices = @transform_0, window_bounds = array<i64: 8, 512>}, {transform_indices = @transform_1, window_bounds = array<i64: 512, 256>}, {transform_indices = @transform_2, window_bounds = array<i64: 1, 256>}, {transform_indices = @transform_3, window_bounds = array<i64: 1, 256>}, {transform_indices = @transform_4, window_bounds = array<i64: 8, 256>}, {transform_indices = @transform_5, window_bounds = array<i64: 8, 256>}]} {
    %c0 = arith.constant 0 : index
    %c0_0 = arith.constant 0 : index
    %0 = vector.load %arg1[%c0, %c0_0] : memref<8x512xf32, #tpu.memory_space<vmem>>, vector<8x512xf32>
    %c0_1 = arith.constant 0 : index
    %c0_2 = arith.constant 0 : index
    %1 = vector.load %arg2[%c0_1, %c0_2] : memref<512x256xf32, #tpu.memory_space<vmem>>, vector<512x256xf32>
    %cst = arith.constant dense<0.000000e+00> : vector<8x256xf32>
    %2 = tpu.matmul %0, %1, %cst {dimension_numbers = #tpu.dot_dimension_numbers<[1], [0], [0], [1], [0, 0, 1, 1], [], []>} : vector<8x512xf32>, vector<512x256xf32>, vector<8x256xf32> -> vector<8x256xf32>
    %cst_3 = arith.constant dense<0.000000e+00> : vector<256xf32>
    %3 = vector.multi_reduction <add>, %2, %cst_3 [0] : vector<8x256xf32> to vector<256xf32>
    %4 = vector.shape_cast %3 : vector<256xf32> to vector<1x256xf32>
    %cst_4 = arith.constant 8.000000e+00 : f32
    %5 = vector.broadcast %cst_4 : f32 to vector<1x256xf32>
    %6 = arith.divf %4, %5 : vector<1x256xf32>
    %7 = vector.broadcast %6 : vector<1x256xf32> to vector<8x256xf32>
    %8 = arith.subf %2, %7 : vector<8x256xf32>
    %9 = arith.mulf %8, %8 : vector<8x256xf32>
    %cst_5 = arith.constant dense<0.000000e+00> : vector<256xf32>
    %10 = vector.multi_reduction <add>, %9, %cst_5 [0] : vector<8x256xf32> to vector<256xf32>
    %11 = vector.shape_cast %10 : vector<256xf32> to vector<1x256xf32>
    %cst_6 = arith.constant 8.000000e+00 : f32
    %12 = vector.broadcast %cst_6 : f32 to vector<1x256xf32>
    %13 = arith.divf %11, %12 : vector<1x256xf32>
    %cst_7 = arith.constant 9.99999974E-6 : f32
    %14 = vector.broadcast %cst_7 : f32 to vector<1x256xf32>
    %15 = arith.addf %13, %14 : vector<1x256xf32>
    %16 = math.rsqrt %15 : vector<1x256xf32>
    %17 = vector.broadcast %16 : vector<1x256xf32> to vector<8x256xf32>
    %18 = arith.mulf %8, %17 : vector<8x256xf32>
    %c0_8 = arith.constant 0 : index
    %c0_9 = arith.constant 0 : index
    %19 = vector.load %arg3[%c0_8, %c0_9] : memref<1x256xf32, #tpu.memory_space<vmem>>, vector<1x256xf32>
    %20 = vector.broadcast %19 : vector<1x256xf32> to vector<8x256xf32>
    %21 = arith.mulf %18, %20 : vector<8x256xf32>
    %c0_10 = arith.constant 0 : index
    %c0_11 = arith.constant 0 : index
    %22 = vector.load %arg4[%c0_10, %c0_11] : memref<1x256xf32, #tpu.memory_space<vmem>>, vector<1x256xf32>
    %23 = vector.broadcast %22 : vector<1x256xf32> to vector<8x256xf32>
    %24 = arith.addf %21, %23 : vector<8x256xf32>
    %25 = arith.negf %24 : vector<8x256xf32>
    %26 = math.exp %25 : vector<8x256xf32>
    %cst_12 = arith.constant 1.000000e+00 : f32
    %27 = vector.broadcast %cst_12 : f32 to vector<8x256xf32>
    %28 = arith.addf %27, %26 : vector<8x256xf32>
    %29 = arith.divf %27, %28 : vector<8x256xf32>
    %c0_13 = arith.constant 0 : index
    %c0_14 = arith.constant 0 : index
    %30 = vector.load %arg5[%c0_13, %c0_14] : memref<8x256xf32, #tpu.memory_space<vmem>>, vector<8x256xf32>
    %31 = arith.mulf %30, %29 : vector<8x256xf32>
    %c0_15 = arith.constant 0 : index
    %c0_16 = arith.constant 0 : index
    %32 = vector.load %arg6[%c0_15, %c0_16] : memref<8x256xf32, #tpu.memory_space<vmem>>, vector<8x256xf32>
    tpu.vector_store %arg6[%c0_15, %c0_16], %31 {strides = array<i32>} : memref<8x256xf32, #tpu.memory_space<vmem>>, vector<8x256xf32>,
    return
  }
  func.func @transform_0(%arg0: i32) -> (i32, i32) {
    %c0_i32 = arith.constant 0 : i32
    %c0_i32_0 = arith.constant 0 : i32
    %c0_i32_1 = arith.constant 0 : i32
    return %c0_i32, %c0_i32_0 : i32, i32
  }
  func.func @transform_1(%arg0: i32) -> (i32, i32) {
    %c0_i32 = arith.constant 0 : i32
    %c0_i32_0 = arith.constant 0 : i32
    return %c0_i32, %arg0 : i32, i32
  }
  func.func @transform_2(%arg0: i32) -> (i32, i32) {
    %c0_i32 = arith.constant 0 : i32
    %c0_i32_0 = arith.constant 0 : i32
    return %c0_i32, %arg0 : i32, i32
  }
  func.func @transform_3(%arg0: i32) -> (i32, i32) {
    %c0_i32 = arith.constant 0 : i32
    %c0_i32_0 = arith.constant 0 : i32
    return %c0_i32, %arg0 : i32, i32
  }
  func.func @transform_4(%arg0: i32) -> (i32, i32) {
    %c0_i32 = arith.constant 0 : i32
    %c0_i32_0 = arith.constant 0 : i32
    return %c0_i32, %arg0 : i32, i32
  }
  func.func @transform_5(%arg0: i32) -> (i32, i32) {
    %c0_i32 = arith.constant 0 : i32
    %c0_i32_0 = arith.constant 0 : i32
    return %c0_i32, %arg0 : i32, i32
  }
}

module attributes {stable_mosaic.version = 11 : i64} {
  func.func @_pool_project_kernel(%arg0: memref<32x64xf32, #tpu.memory_space<vmem>>, %arg1: memref<64x128xf32, #tpu.memory_space<vmem>>, %arg2: memref<1x128xf32, #tpu.memory_space<vmem>>, %arg3: memref<1x128xf32, #tpu.memory_space<vmem>>, %arg4: memref<128x512xf32, #tpu.memory_space<vmem>>, %arg5: memref<8x512xf32, #tpu.memory_space<vmem>>) attributes {dimension_semantics = [], scalar_prefetch = 0 : i64, scratch_operands = 0 : i64, tpu.core_type = #tpu.core_type<tc>} {
    %c0 = arith.constant 0 : index
    %c0_0 = arith.constant 0 : index
    %0 = vector.load %arg0[%c0, %c0_0] : memref<32x64xf32, #tpu.memory_space<vmem>>, vector<32x64xf32>
    %c0_1 = arith.constant 0 : index
    %c0_2 = arith.constant 0 : index
    %1 = vector.load %arg1[%c0_1, %c0_2] : memref<64x128xf32, #tpu.memory_space<vmem>>, vector<64x128xf32>
    %cst = arith.constant dense<0.000000e+00> : vector<32x128xf32>
    %2 = tpu.matmul %0, %1, %cst {dimension_numbers = #tpu.dot_dimension_numbers<[1], [0], [0], [1], [0, 0, 1, 1], [], []>} : vector<32x64xf32>, vector<64x128xf32>, vector<32x128xf32> -> vector<32x128xf32>
    %cst_3 = arith.constant dense<0.000000e+00> : vector<128xf32>
    %3 = vector.multi_reduction <add>, %2, %cst_3 [0] : vector<32x128xf32> to vector<128xf32>
    %4 = vector.shape_cast %3 : vector<128xf32> to vector<1x128xf32>
    %cst_4 = arith.constant 3.200000e+01 : f32
    %5 = vector.broadcast %cst_4 : f32 to vector<1x128xf32>
    %6 = arith.divf %4, %5 : vector<1x128xf32>
    %7 = vector.broadcast %6 : vector<1x128xf32> to vector<32x128xf32>
    %8 = arith.subf %2, %7 : vector<32x128xf32>
    %9 = arith.mulf %8, %8 : vector<32x128xf32>
    %cst_5 = arith.constant dense<0.000000e+00> : vector<128xf32>
    %10 = vector.multi_reduction <add>, %9, %cst_5 [0] : vector<32x128xf32> to vector<128xf32>
    %11 = vector.shape_cast %10 : vector<128xf32> to vector<1x128xf32>
    %cst_6 = arith.constant 3.200000e+01 : f32
    %12 = vector.broadcast %cst_6 : f32 to vector<1x128xf32>
    %13 = arith.divf %11, %12 : vector<1x128xf32>
    %cst_7 = arith.constant 9.99999974E-6 : f32
    %14 = vector.broadcast %cst_7 : f32 to vector<1x128xf32>
    %15 = arith.addf %13, %14 : vector<1x128xf32>
    %16 = math.rsqrt %15 : vector<1x128xf32>
    %17 = vector.broadcast %16 : vector<1x128xf32> to vector<32x128xf32>
    %18 = arith.mulf %8, %17 : vector<32x128xf32>
    %c0_8 = arith.constant 0 : index
    %c0_9 = arith.constant 0 : index
    %19 = vector.load %arg2[%c0_8, %c0_9] : memref<1x128xf32, #tpu.memory_space<vmem>>, vector<1x128xf32>
    %20 = vector.broadcast %19 : vector<1x128xf32> to vector<32x128xf32>
    %21 = arith.mulf %18, %20 : vector<32x128xf32>
    %c0_10 = arith.constant 0 : index
    %c0_11 = arith.constant 0 : index
    %22 = vector.load %arg3[%c0_10, %c0_11] : memref<1x128xf32, #tpu.memory_space<vmem>>, vector<1x128xf32>
    %23 = vector.broadcast %22 : vector<1x128xf32> to vector<32x128xf32>
    %24 = arith.addf %21, %23 : vector<32x128xf32>
    %cst_12 = arith.constant dense<0xFF800000> : vector<32xf32>
    %25 = vector.multi_reduction <maximumf>, %24, %cst_12 [1] : vector<32x128xf32> to vector<32xf32>
    %26 = vector.shape_cast %25 : vector<32xf32> to vector<32x1xf32>
    %27 = vector.broadcast %26 : vector<32x1xf32> to vector<32x128xf32>
    %28 = arith.subf %24, %27 : vector<32x128xf32>
    %29 = math.exp %28 : vector<32x128xf32>
    %cst_13 = arith.constant dense<0.000000e+00> : vector<32xf32>
    %30 = vector.multi_reduction <add>, %29, %cst_13 [1] : vector<32x128xf32> to vector<32xf32>
    %31 = vector.shape_cast %30 : vector<32xf32> to vector<32x1xf32>
    %32 = vector.broadcast %31 : vector<32x1xf32> to vector<32x128xf32>
    %33 = arith.divf %29, %32 : vector<32x128xf32>
    %34 = tpu.iota {dimensions = array<i32: 1>} : vector<8x32xi32>
    %35 = tpu.iota {dimensions = array<i32: 0>} : vector<8x32xi32>
    %c4_i32 = arith.constant 4 : i32
    %36 = vector.broadcast %c4_i32 : i32 to vector<8x32xi32>
    %37 = arith.muli %35, %36 : vector<8x32xi32>
    %38 = arith.cmpi sge, %34, %37 : vector<8x32xi32>
    %c1_i32 = arith.constant 1 : i32
    %39 = vector.broadcast %c1_i32 : i32 to vector<8x32xi32>
    %40 = arith.addi %35, %39 : vector<8x32xi32>
    %c4_i32_14 = arith.constant 4 : i32
    %41 = vector.broadcast %c4_i32_14 : i32 to vector<8x32xi32>
    %42 = arith.muli %40, %41 : vector<8x32xi32>
    %43 = arith.cmpi slt, %34, %42 : vector<8x32xi32>
    %44 = arith.andi %38, %43 : vector<8x32xi1>
    %cst_15 = arith.constant 1.000000e+00 : f32
    %cst_16 = arith.constant 0.000000e+00 : f32
    %45 = vector.broadcast %cst_15 : f32 to vector<8x32xf32>
    %46 = vector.broadcast %cst_16 : f32 to vector<8x32xf32>
    %47 = arith.select %44, %45, %46 : vector<8x32xi1>, vector<8x32xf32>
    %cst_17 = arith.constant dense<0.000000e+00> : vector<8x128xf32>
    %48 = tpu.matmul %47, %33, %cst_17 {dimension_numbers = #tpu.dot_dimension_numbers<[1], [0], [0], [1], [0, 0, 1, 1], [], []>} : vector<8x32xf32>, vector<32x128xf32>, vector<8x128xf32> -> vector<8x128xf32>
    %49 = arith.mulf %48, %48 : vector<8x128xf32>
    %cst_18 = arith.constant dense<0.000000e+00> : vector<8xf32>
    %50 = vector.multi_reduction <add>, %49, %cst_18 [1] : vector<8x128xf32> to vector<8xf32>
    %51 = vector.shape_cast %50 : vector<8xf32> to vector<8x1xf32>
    %52 = math.sqrt %51 : vector<8x1xf32>
    %cst_19 = arith.constant 9.99999996E-13 : f32
    %53 = vector.broadcast %cst_19 : f32 to vector<8x1xf32>
    %54 = arith.maximumf %52, %53 : vector<8x1xf32>
    %55 = vector.broadcast %54 : vector<8x1xf32> to vector<8x128xf32>
    %56 = arith.divf %48, %55 : vector<8x128xf32>
    %c0_20 = arith.constant 0 : index
    %c0_21 = arith.constant 0 : index
    %57 = vector.load %arg4[%c0_20, %c0_21] : memref<128x512xf32, #tpu.memory_space<vmem>>, vector<128x512xf32>
    %cst_22 = arith.constant dense<0.000000e+00> : vector<8x512xf32>
    %58 = tpu.matmul %56, %57, %cst_22 {dimension_numbers = #tpu.dot_dimension_numbers<[1], [0], [0], [1], [0, 0, 1, 1], [], []>} : vector<8x128xf32>, vector<128x512xf32>, vector<8x512xf32> -> vector<8x512xf32>
    %c0_23 = arith.constant 0 : index
    %c0_24 = arith.constant 0 : index
    %59 = vector.load %arg5[%c0_23, %c0_24] : memref<8x512xf32, #tpu.memory_space<vmem>>, vector<8x512xf32>
    tpu.vector_store %arg5[%c0_23, %c0_24], %58 {strides = array<i32>} : memref<8x512xf32, #tpu.memory_space<vmem>>, vector<8x512xf32>,
    return
  }
}

</mosaic_0001>

<bundles_post_ra>
// kernel: soft_dbow.3
= control target key start
LH: loop header
LB: loop body
LE: loop exit
PB: predicated region body
PF: predicated region fallthrough
CT: control target
= control target key end

     0   :  { %10 = vsyncpa [#allocation3], 0  ;;  %s1291_s0 = inlined_call_operand.vmem [shape: f32[8,512], index: 0, kind: input, shape index: {}, may-alias: {0,4}]   ;;  %s1292_s1 = inlined_call_operand.hbm [shape: f32[512,512], index: 1, kind: input, shape index: {}]   ;;  %s1293_s2 = inlined_call_operand.vmem [shape: f32[1,512], index: 2, kind: input, shape index: {}]   ;;  %s1294_s3 = inlined_call_operand.vmem [shape: f32[1,512], index: 3, kind: input, shape index: {}]   ;;  %s1295_s4 = inlined_call_operand.vmem [shape: f32[8,512], index: 4, kind: input, shape index: {}, may-alias: {0,4}]   ;;  %s1296_s5 = inlined_call_operand.hbm [shape: f32[8,512], index: 5, kind: output, shape index: {}]  }
   0x1   :  { %12 = vsyncpa [#allocation3 + $0x1], 0 }
   0x2   :  { %13 = vsyncpa [#allocation4], 0 }
   0x3   :  { %15 = vsyncpa [#allocation4 + $0x1], 0  ;;  %s991_s18 = smov 0   ;;  %s993_s19 = smov 0  }
   0x4   :  { %s995_s20 = smov 0   ;;  %s997_s21 = smov 0  }
   0x5 LB: > { %s1012_s22 = sadd.s32 4294967295, %s954_s21   ;;  %s779_s23 = sadd.s32 4294967294, %s954_s21   ;;  %s954_s21 = sphi %s997_s21, %s1312_s21   ;;  %s950_s20 = sphi %s995_s20, %s1311_s20   ;;  %s946_s19 = sphi %s993_s19, %s1310_s19   ;;  %s942_s18 = sphi %s991_s18, %s1309_s18  }
   0x6   : > { %s1016_s24 = sadd.s32 1, %s954_s21   ;;  %s49_s25 = sadd.s32 1, %s950_s20 }
   0x7   : > { %s46_s26 = ssub.s32 %s954_s21, %s1016_s24  ;;  %p56_p0 = scmp.ne.s32.totalorder %s950_s20, %s946_s19 }
   0x8   : > { %p47_p1 = scmp.eq.s32.totalorder %s46_s26, 0  ;;  %p57_p2 = scmp.eq.s32.totalorder %s954_s21, 0 }
   0x9   : > { %p62_p3 = scmp.ne.s32.totalorder %s946_s19, %s942_s18  ;;  %p63_p4 = scmp.eq.s32.totalorder %s1012_s22, 0 }
   0xa   : > { %s1028_s27 = scalar_select %p47_p1, %s950_s20, %s49_s25  }
   0xb   : > { %p1030_p5 = por %p57_p2, %p56_p0  ;;  %p1034_p6 = por %p63_p4, %p62_p3 }
   0xc   : > { %p164_p7 = scmp.eq.s32.totalorder %s1012_s22, 1  ;;  %p170_p8 = scmp.eq.s32.totalorder %s779_s23, 1 }
   0xd   : > { %s1300_s29 = scalar_select %p1034_p6, 1, 0 }
   0xe   : > { %p813_p10 = scmp.lt.s32.totalorder %s954_s21, 2  ;;  %p1041_p11 = por %p164_p7, %p56_p0 }
   0xf   : > { %p1045_p12 = por %p170_p8, %p62_p3  ;;  %s193_s7 = sand.u32 1, %s950_s20  }
  0x10   : > { %s1301_s30 = scalar_select %p1041_p11, 1, 0 }
  0x11   : > { %s1302_s6 = scalar_select %p1045_p12, 1, 0 }
  0x12   : > { %s799_s8 = sshll.u32 %s954_s21, 8  ;;  %s782_s9 = sshll.u32 %s193_s7, 10 }
  0x13   : > { %s1054_s12 = scalar_lea.hbm %s1292_s1, %s799_s8  ;;  %s197_s13 = scalar_lea.vmem [#allocation2], %s782_s9 }
  0x14   : > { %s204_s14 = sshll.u32 %s197_s13, 4  ;;  %p1058_p13 = pnand %p813_p10, %p1030_p5  ;;  %s1062_s14 = int_to_ptr.vmem [resolvable:$true] %s204_s14 }
  0x15   : > { %s1065_s16 = scalar_lea.sflag [#allocation3], %s193_s7  ;;  %s862_s17 = scalar_lea.hbm %s1054_s12, 16384 }
  0x16   : > { %p863_p1 = scmp.ne.s32.totalorder %s1054_s12, %s862_s17  ;;  %p864_p2 = pneg %p1058_p13 }
  0x17   : > { %s867_s26 = scalar_lea.hbm %s1292_s1, 32768  ;;  %p868_p5 = scmp.lt.s32.totalorder %s1054_s12, %s1292_s1 }
  0x18   : > { %p865_p3 = pnand %p864_p2, %p863_p1  ;;  %p869_p7 = scmp.lt.s32.totalorder %s867_s26, %s862_s17 }
  0x1a   : > { %p866_p4 = pneg %p865_p3  ;;  %p870_p8 = por %p869_p7, %p868_p5 }
  0x1c   : > { %p871_p10 = pnand %p870_p8, %p866_p4 }
  0x1e   : > { %874 = shalt.err (!%p871_p10)
}
  0x1f   : > { %s875_s7 = scalar_lea.vmem %s1062_s14, 16384  ;;  %s956_s9 = smov [#allocation2]  }
  0x20   : > { %p876_p9 = scmp.ne.s32.totalorder %s1062_s14, %s875_s7  ;;  %s880_s10 = sshll.u32 %s956_s9, 4  ;;  %s881_s10 = int_to_ptr.vmem [resolvable:$false] %s880_s10 }
  0x21   : > { %s882_s11 = scalar_lea.vmem %s881_s10, 32768  ;;  %p883_p3 = scmp.lt.s32.totalorder %s1062_s14, %s881_s10 }
  0x22   : > { %p878_p0 = pnand %p876_p9, %p864_p2  ;;  %p884_p12 = scmp.lt.s32.totalorder %s882_s11, %s875_s7 }
  0x24   : > { %p879_p1 = pneg %p878_p0  ;;  %p885_p11 = por %p884_p12, %p883_p3 }
  0x26   : > { %p886_p6 = pnand %p885_p11, %p879_p1 }
  0x28   : > { %889 = shalt.err (!%p886_p6)
}
  0x29   : > { %s957_s13 = smov 512   ;;  %s958_s17 = smov 256  }
  0x2a   : > { %s959_s23 = smov 16   ;;  %p237_p9 = scmp.lt.s32.totalorder %s954_s21, 3 }
  0x2b   : > { %808 = dma.hbm_to_vmem [thread:$0]  (!%p1058_p13), %s1054_s12, 16384, %s1062_s14, %s1065_s16, %s957_s13, %s958_s17, %s959_s23  }
  0x2c   : > { %p1304_p0 = scmp.ge.s32.totalorder %s954_s21, 1 }
  0x2e   : > { %p238_p2 = pnand %p1304_p0, %p237_p9 }
  0x2f   : > { %s1090_s25 = sand.u32 (!%p238_p2), 1, %s946_s19   ;;  %p1305_p6 = scmp.ne.s32.totalorder (!%p238_p2), %s1300_s29, 0 }
  0x30   : > { %241 = sbr.rel (%p238_p2) target bundleno = 419 (0x1a3), region = 40  ;;  %s786_s26 = sshll.u32 (!%p238_p2), %s1090_s25, 10 }
  0x31   : > { %s244_s28 = scalar_lea.sflag (!%p238_p2), [#allocation3], %s1090_s25  ;;  %s1094_s8 = scalar_lea.vmem (!%p238_p2), [#allocation2], %s786_s26 }
  0x35   : > { %933 = dma.done.wait (%p1305_p6), %s244_s28, 16384  }
  0x36   : > { %935 = vsyncadd (%p1305_p6), %s244_s28, 4294950912  ;;  %v340_v0 = vld [vmem:[%s1094_s8 + $0xf8] sm:$0xff]  ;;  %v339_v2 = vld [vmem:[%s1094_s8 + $0xf0] sm:$0xff]  ;;  %s788_s11 = sshll.u32 %s1012_s22, 1  ;;  %s787_s12 = sshll.u32 %s1090_s25, 4 }
  0x37   : > { %v404_v1 = vld [vmem:[%s1094_s8 + $0x2f8] sm:$0xff]  ;;  %437 = vmatprep.subr.mxu0 %v340_v0  ;;  %v403_v3 = vld [vmem:[%s1094_s8 + $0x2f0] sm:$0xff]  ;;  %v338_v4 = vld [vmem:[%s1094_s8 + $0xe8] sm:$0xff]  ;;  %p289_p11 = scmp.lt.s32.totalorder %s788_s11, 3  ;;  %s800_s7 = sshll.u32 %s1012_s22, 8 }
  0x38   : > { %508 = vmatprep.subr.mxu1 %v404_v1  ;;  %v402_v5 = vld [vmem:[%s1094_s8 + $0x2e8] sm:$0xff]  ;;  %438 = vmatpush1.msra.mxu0 %v339_v2  ;;  %v337_v6 = vld [vmem:[%s1094_s8 + $0xe0] sm:$0xff]  ;;  %v336_v8 = vld [vmem:[%s1094_s8 + $0xd8] sm:$0xff]  ;;  %s286_s9 = scalar_lea.vmem [#allocation5], %s787_s12  ;;  %p1306_p13 = scmp.ne.s32.totalorder %s1301_s30, 0 }
  0x39   : > { %509 = vmatpush1.msra.mxu1 %v403_v3  ;;  %v401_v7 = vld [vmem:[%s1094_s8 + $0x2e0] sm:$0xff]  ;;  %439 = vmatprep.subr.mxu0 %v338_v4  ;;  %v400_v9 = vld [vmem:[%s1094_s8 + $0x2d8] sm:$0xff]  ;;  %v335_v10 = vld [vmem:[%s1094_s8 + $0xd0] sm:$0xff]  ;;  %s1314_s11 = smov (!%p289_p11, %s788_s11), 3  ;;  %s679_s10 = sshll.u32 %s286_s9, 4  ;;  %s680_s10 = int_to_ptr.vmem [resolvable:$true] %s679_s10 }
  0x3a   : > { %510 = vmatprep.subr.mxu1 %v402_v5  ;;  %v399_v11 = vld [vmem:[%s1094_s8 + $0x2d0] sm:$0xff]  ;;  %440 = vmatpush1.msra.mxu0 %v337_v6  ;;  %v334_v12 = vld [vmem:[%s1094_s8 + $0xc8] sm:$0xff]  ;;  %v333_v14 = vld [vmem:[%s1094_s8 + $0xc0] sm:$0xff]  ;;  %s291_s23 = scalar_lea.vmem %s1293_s2, %s1314_s11  ;;  %s791_s29 = sshll.u32 %s1314_s11, 3 }
  0x3b   : > { %511 = vmatpush1.msra.mxu1 %v401_v7  ;;  %v398_v13 = vld [vmem:[%s1094_s8 + $0x2c8] sm:$0xff]  ;;  %441 = vmatprep.subr.mxu0 %v336_v8  ;;  %v397_v15 = vld [vmem:[%s1094_s8 + $0x2c0] sm:$0xff]  ;;  %v332_v16 = vld [vmem:[%s1094_s8 + $0xb8] sm:$0xff]  ;;  %s302_s16 = scalar_lea.vmem %s1295_s4, %s791_s29  ;;  %s890_s26 = scalar_lea.vmem %s680_s10, 256 }
  0x3c   : > { %512 = vmatprep.subr.mxu1 %v400_v9  ;;  %442 = vmatpush1.msra.mxu0 %v335_v10  ;;  %v396_v17 = vld [vmem:[%s1094_s8 + $0x2b8] sm:$0xff]  ;;  %v331_v18 = vld [vmem:[%s1094_s8 + $0xb0] sm:$0xff]  ;;  %v330_v20 = vld [vmem:[%s1094_s8 + $0xa8] sm:$0xff]  ;;  %p891_p12 = scmp.ne.s32.totalorder %s680_s10, %s890_s26  ;;  %s960_s28 = smov [#allocation5]  }
  0x3d   : > { %513 = vmatpush1.msra.mxu1 %v399_v11  ;;  %443 = vmatprep.subr.mxu0 %v334_v12  ;;  %v395_v19 = vld [vmem:[%s1094_s8 + $0x2b0] sm:$0xff]  ;;  %v394_v21 = vld [vmem:[%s1094_s8 + $0x2a8] sm:$0xff]  ;;  %v329_v22 = vld [vmem:[%s1094_s8 + $0xa0] sm:$0xff]  ;;  %s894_s22 = sshll.u32 %s960_s28, 4  ;;  %s895_s22 = int_to_ptr.vmem [resolvable:$false] %s894_s22 }
  0x3e   : > { %514 = vmatprep.subr.mxu1 %v398_v13  ;;  %444 = vmatpush1.msra.mxu0 %v333_v14  ;;  %v393_v23 = vld [vmem:[%s1094_s8 + $0x2a0] sm:$0xff]  ;;  %v328_v24 = vld [vmem:[%s1094_s8 + $0x98] sm:$0xff]  ;;  %v327_v26 = vld [vmem:[%s1094_s8 + $0x90] sm:$0xff]  ;;  %p892_p4 = pnand %p891_p12, %p1306_p13  ;;  %p897_p7 = scmp.lt.s32.totalorder %s680_s10, %s895_s22 }
  0x3f   : > { %515 = vmatpush1.msra.mxu1 %v397_v15  ;;  %445 = vmatprep.subr.mxu0 %v332_v16  ;;  %v392_v25 = vld [vmem:[%s1094_s8 + $0x298] sm:$0xff]  ;;  %v391_v27 = vld [vmem:[%s1094_s8 + $0x290] sm:$0xff]  ;;  %v326_v28 = vld [vmem:[%s1094_s8 + $0x88] sm:$0xff] }
  0x40   : > { %516 = vmatprep.subr.mxu1 %v396_v17  ;;  %446 = vmatpush1.msra.mxu0 %v331_v18  ;;  %v390_v29 = vld [vmem:[%s1094_s8 + $0x288] sm:$0xff]  ;;  %v325_v30 = vld [vmem:[%s1094_s8 + $0x80] sm:$0xff]  ;;  %v324_v32 = vld [vmem:[%s1094_s8 + $0x78] sm:$0xff]  ;;  %p893_p5 = pneg %p892_p4 }
  0x41   : > { %517 = vmatpush1.msra.mxu1 %v395_v19  ;;  %447 = vmatprep.subr.mxu0 %v330_v20  ;;  %v389_v31 = vld [vmem:[%s1094_s8 + $0x280] sm:$0xff]  ;;  %v388_v33 = vld [vmem:[%s1094_s8 + $0x278] sm:$0xff]  ;;  %v323_v34 = vld [vmem:[%s1094_s8 + $0x70] sm:$0xff] }
  0x42   : > { %518 = vmatprep.subr.mxu1 %v394_v21  ;;  %448 = vmatpush1.msra.mxu0 %v329_v22  ;;  %v387_v35 = vld [vmem:[%s1094_s8 + $0x270] sm:$0xff]  ;;  %v322_v36 = vld [vmem:[%s1094_s8 + $0x68] sm:$0xff]  ;;  %v321_v38 = vld [vmem:[%s1094_s8 + $0x60] sm:$0xff] }
  0x43   : > { %519 = vmatpush1.msra.mxu1 %v393_v23  ;;  %449 = vmatprep.subr.mxu0 %v328_v24  ;;  %v386_v37 = vld [vmem:[%s1094_s8 + $0x268] sm:$0xff]  ;;  %v385_v39 = vld [vmem:[%s1094_s8 + $0x260] sm:$0xff]  ;;  %v320_v40 = vld [vmem:[%s1094_s8 + $0x58] sm:$0xff] }
  0x44   : > { %520 = vmatprep.subr.mxu1 %v392_v25  ;;  %450 = vmatpush1.msra.mxu0 %v327_v26  ;;  %v384_v41 = vld [vmem:[%s1094_s8 + $0x258] sm:$0xff]  ;;  %v319_v42 = vld [vmem:[%s1094_s8 + $0x50] sm:$0xff]  ;;  %v318_v44 = vld [vmem:[%s1094_s8 + $0x48] sm:$0xff] }
  0x45   : > { %521 = vmatpush1.msra.mxu1 %v391_v27  ;;  %451 = vmatprep.subr.mxu0 %v326_v28  ;;  %v383_v43 = vld [vmem:[%s1094_s8 + $0x250] sm:$0xff]  ;;  %v382_v45 = vld [vmem:[%s1094_s8 + $0x248] sm:$0xff]  ;;  %v317_v46 = vld [vmem:[%s1094_s8 + $0x40] sm:$0xff] }
  0x46   : > { %522 = vmatprep.subr.mxu1 %v390_v29  ;;  %452 = vmatpush1.msra.mxu0 %v325_v30  ;;  %v381_v47 = vld [vmem:[%s1094_s8 + $0x240] sm:$0xff]  ;;  %v316_v48 = vld [vmem:[%s1094_s8 + $0x38] sm:$0xff]  ;;  %v315_v50 = vld [vmem:[%s1094_s8 + $0x30] sm:$0xff] }
  0x47   : > { %523 = vmatpush1.msra.mxu1 %v389_v31  ;;  %453 = vmatprep.subr.mxu0 %v324_v32  ;;  %v380_v49 = vld [vmem:[%s1094_s8 + $0x238] sm:$0xff]  ;;  %v379_v51 = vld [vmem:[%s1094_s8 + $0x230] sm:$0xff]  ;;  %v314_v52 = vld [vmem:[%s1094_s8 + $0x28] sm:$0xff] }
  0x48   : > { %524 = vmatprep.subr.mxu1 %v388_v33  ;;  %454 = vmatpush1.msra.mxu0 %v323_v34  ;;  %v378_v53 = vld [vmem:[%s1094_s8 + $0x228] sm:$0xff]  ;;  %v313_v54 = vld [vmem:[%s1094_s8 + $0x20] sm:$0xff]  ;;  %v312_v56 = vld [vmem:[%s1094_s8 + $0x18] sm:$0xff] }
  0x49   : > { %525 = vmatpush1.msra.mxu1 %v387_v35  ;;  %455 = vmatprep.subr.mxu0 %v322_v36  ;;  %v377_v55 = vld [vmem:[%s1094_s8 + $0x220] sm:$0xff]  ;;  %v376_v57 = vld [vmem:[%s1094_s8 + $0x218] sm:$0xff]  ;;  %v311_v58 = vld [vmem:[%s1094_s8 + $0x10] sm:$0xff] }
  0x4a   : > { %526 = vmatprep.subr.mxu1 %v386_v37  ;;  %456 = vmatpush1.msra.mxu0 %v321_v38  ;;  %v375_v59 = vld [vmem:[%s1094_s8 + $0x210] sm:$0xff]  ;;  %v310_v60 = vld [vmem:[%s1094_s8 + $0x8] sm:$0xff]  ;;  %v309_v62 = vld [vmem:[%s1094_s8] sm:$0xff] }
  0x4b   : > { %527 = vmatpush1.msra.mxu1 %v385_v39  ;;  %457 = vmatprep.subr.mxu0 %v320_v40  ;;  %v374_v61 = vld [vmem:[%s1094_s8 + $0x208] sm:$0xff]  ;;  %v373_v63 = vld [vmem:[%s1094_s8 + $0x200] sm:$0xff]  ;;  %v372_v0 = vld [vmem:[%s1094_s8 + $0x1f8] sm:$0xff] }
  0x4c   : > { %528 = vmatprep.subr.mxu1 %v384_v41  ;;  %458 = vmatpush1.msra.mxu0 %v319_v42  ;;  %v436_v1 = vld [vmem:[%s1094_s8 + $0x3f8] sm:$0xff]  ;;  %v371_v2 = vld [vmem:[%s1094_s8 + $0x1f0] sm:$0xff]  ;;  %v370_v4 = vld [vmem:[%s1094_s8 + $0x1e8] sm:$0xff] }
  0x4d   : > { %529 = vmatpush1.msra.mxu1 %v383_v43  ;;  %459 = vmatprep.subr.mxu0 %v318_v44  ;;  %v435_v3 = vld [vmem:[%s1094_s8 + $0x3f0] sm:$0xff]  ;;  %v434_v5 = vld [vmem:[%s1094_s8 + $0x3e8] sm:$0xff]  ;;  %v369_v6 = vld [vmem:[%s1094_s8 + $0x1e0] sm:$0xff] }
  0x4e   : > { %530 = vmatprep.subr.mxu1 %v382_v45  ;;  %460 = vmatpush1.msra.mxu0 %v317_v46  ;;  %v433_v7 = vld [vmem:[%s1094_s8 + $0x3e0] sm:$0xff]  ;;  %v368_v8 = vld [vmem:[%s1094_s8 + $0x1d8] sm:$0xff]  ;;  %v367_v10 = vld [vmem:[%s1094_s8 + $0x1d0] sm:$0xff] }
  0x4f   : > { %531 = vmatpush1.msra.mxu1 %v381_v47  ;;  %461 = vmatprep.subr.mxu0 %v316_v48  ;;  %v432_v9 = vld [vmem:[%s1094_s8 + $0x3d8] sm:$0xff]  ;;  %v431_v11 = vld [vmem:[%s1094_s8 + $0x3d0] sm:$0xff]  ;;  %v366_v12 = vld [vmem:[%s1094_s8 + $0x1c8] sm:$0xff] }
  0x50   : > { %532 = vmatprep.subr.mxu1 %v380_v49  ;;  %462 = vmatpush1.msra.mxu0 %v315_v50  ;;  %v430_v13 = vld [vmem:[%s1094_s8 + $0x3c8] sm:$0xff]  ;;  %v365_v14 = vld [vmem:[%s1094_s8 + $0x1c0] sm:$0xff]  ;;  %v364_v16 = vld [vmem:[%s1094_s8 + $0x1b8] sm:$0xff] }
  0x51   : > { %533 = vmatpush1.msra.mxu1 %v379_v51  ;;  %463 = vmatprep.subr.mxu0 %v314_v52  ;;  %v429_v15 = vld [vmem:[%s1094_s8 + $0x3c0] sm:$0xff]  ;;  %v428_v17 = vld [vmem:[%s1094_s8 + $0x3b8] sm:$0xff]  ;;  %v363_v18 = vld [vmem:[%s1094_s8 + $0x1b0] sm:$0xff] }
  0x52   : > { %534 = vmatprep.subr.mxu1 %v378_v53  ;;  %464 = vmatpush1.msra.mxu0 %v313_v54  ;;  %v427_v19 = vld [vmem:[%s1094_s8 + $0x3b0] sm:$0xff]  ;;  %v362_v20 = vld [vmem:[%s1094_s8 + $0x1a8] sm:$0xff]  ;;  %v361_v22 = vld [vmem:[%s1094_s8 + $0x1a0] sm:$0xff] }
  0x53   : > { %535 = vmatpush1.msra.mxu1 %v377_v55  ;;  %465 = vmatprep.subr.mxu0 %v312_v56  ;;  %v426_v21 = vld [vmem:[%s1094_s8 + $0x3a8] sm:$0xff]  ;;  %v425_v23 = vld [vmem:[%s1094_s8 + $0x3a0] sm:$0xff]  ;;  %v360_v24 = vld [vmem:[%s1094_s8 + $0x198] sm:$0xff] }
  0x54   : > { %536 = vmatprep.subr.mxu1 %v376_v57  ;;  %466 = vmatpush1.msra.mxu0 %v311_v58  ;;  %v424_v25 = vld [vmem:[%s1094_s8 + $0x398] sm:$0xff]  ;;  %v359_v26 = vld [vmem:[%s1094_s8 + $0x190] sm:$0xff]  ;;  %v358_v28 = vld [vmem:[%s1094_s8 + $0x188] sm:$0xff] }
  0x55   : > { %537 = vmatpush1.msra.mxu1 %v375_v59  ;;  %467 = vmatprep.subr.mxu0 %v310_v60  ;;  %v423_v27 = vld [vmem:[%s1094_s8 + $0x390] sm:$0xff]  ;;  %v422_v29 = vld [vmem:[%s1094_s8 + $0x388] sm:$0xff]  ;;  %v357_v30 = vld [vmem:[%s1094_s8 + $0x180] sm:$0xff] }
  0x56   : > { %538 = vmatprep.subr.mxu1 %v374_v61  ;;  %468 = vmatpush1.msra.mxu0 %v309_v62  ;;  %v421_v31 = vld [vmem:[%s1094_s8 + $0x380] sm:$0xff]  ;;  %v356_v32 = vld [vmem:[%s1094_s8 + $0x178] sm:$0xff]  ;;  %v355_v34 = vld [vmem:[%s1094_s8 + $0x170] sm:$0xff] }
  0x57   : > { %539 = vmatpush1.msra.mxu1 %v373_v63  ;;  %469 = vmatprep.subr.mxu0 %v372_v0  ;;  %v420_v33 = vld [vmem:[%s1094_s8 + $0x378] sm:$0xff]  ;;  %v419_v35 = vld [vmem:[%s1094_s8 + $0x370] sm:$0xff]  ;;  %v354_v36 = vld [vmem:[%s1094_s8 + $0x168] sm:$0xff] }
  0x58   : > { %540 = vmatprep.subr.mxu1 %v436_v1  ;;  %470 = vmatpush2.msra.mxu0 %v371_v2  ;;  %v418_v37 = vld [vmem:[%s1094_s8 + $0x368] sm:$0xff]  ;;  %v353_v38 = vld [vmem:[%s1094_s8 + $0x160] sm:$0xff]  ;;  %v352_v40 = vld [vmem:[%s1094_s8 + $0x158] sm:$0xff] }
  0x59   : > { %541 = vmatpush2.msra.mxu1 %v435_v3  ;;  %471 = vmatprep.subr.mxu0 %v370_v4  ;;  %v417_v39 = vld [vmem:[%s1094_s8 + $0x360] sm:$0xff]  ;;  %v416_v41 = vld [vmem:[%s1094_s8 + $0x358] sm:$0xff]  ;;  %v351_v42 = vld [vmem:[%s1094_s8 + $0x150] sm:$0xff] }
  0x5a   : > { %542 = vmatprep.subr.mxu1 %v434_v5  ;;  %472 = vmatpush2.msra.mxu0 %v369_v6  ;;  %v415_v43 = vld [vmem:[%s1094_s8 + $0x350] sm:$0xff]  ;;  %v350_v44 = vld [vmem:[%s1094_s8 + $0x148] sm:$0xff]  ;;  %v349_v46 = vld [vmem:[%s1094_s8 + $0x140] sm:$0xff] }
  0x5b   : > { %543 = vmatpush2.msra.mxu1 %v433_v7  ;;  %473 = vmatprep.subr.mxu0 %v368_v8  ;;  %v414_v45 = vld [vmem:[%s1094_s8 + $0x348] sm:$0xff]  ;;  %v413_v47 = vld [vmem:[%s1094_s8 + $0x340] sm:$0xff]  ;;  %v348_v48 = vld [vmem:[%s1094_s8 + $0x138] sm:$0xff] }
  0x5c   : > { %544 = vmatprep.subr.mxu1 %v432_v9  ;;  %474 = vmatpush2.msra.mxu0 %v367_v10  ;;  %v412_v49 = vld [vmem:[%s1094_s8 + $0x338] sm:$0xff]  ;;  %v347_v50 = vld [vmem:[%s1094_s8 + $0x130] sm:$0xff]  ;;  %v346_v52 = vld [vmem:[%s1094_s8 + $0x128] sm:$0xff] }
  0x5d   : > { %545 = vmatpush2.msra.mxu1 %v431_v11  ;;  %475 = vmatprep.subr.mxu0 %v366_v12  ;;  %v411_v51 = vld [vmem:[%s1094_s8 + $0x330] sm:$0xff]  ;;  %v410_v53 = vld [vmem:[%s1094_s8 + $0x328] sm:$0xff]  ;;  %v345_v54 = vld [vmem:[%s1094_s8 + $0x120] sm:$0xff] }
  0x5e   : > { %546 = vmatprep.subr.mxu1 %v430_v13  ;;  %476 = vmatpush2.msra.mxu0 %v365_v14  ;;  %v409_v55 = vld [vmem:[%s1094_s8 + $0x320] sm:$0xff]  ;;  %v344_v56 = vld [vmem:[%s1094_s8 + $0x118] sm:$0xff]  ;;  %v343_v58 = vld [vmem:[%s1094_s8 + $0x110] sm:$0xff] }
  0x5f   : > { %547 = vmatpush2.msra.mxu1 %v429_v15  ;;  %477 = vmatprep.subr.mxu0 %v364_v16  ;;  %v408_v57 = vld [vmem:[%s1094_s8 + $0x318] sm:$0xff]  ;;  %v407_v59 = vld [vmem:[%s1094_s8 + $0x310] sm:$0xff]  ;;  %v342_v60 = vld [vmem:[%s1094_s8 + $0x108] sm:$0xff] }
  0x60   : > { %548 = vmatprep.subr.mxu1 %v428_v17  ;;  %478 = vmatpush2.msra.mxu0 %v363_v18  ;;  %v406_v61 = vld [vmem:[%s1094_s8 + $0x308] sm:$0xff]  ;;  %v341_v62 = vld [vmem:[%s1094_s8 + $0x100] sm:$0xff]  ;;  %v308_v1 = vld [vmem:[%s1291_s0 + $0x18] sm:$0xff] }
  0x61   : > { %549 = vmatpush2.msra.mxu1 %v427_v19  ;;  %479 = vmatprep.subr.mxu0 %v362_v20  ;;  %v306_v63 = vld [vmem:[%s1291_s0 + $0x8] sm:$0xff]  ;;  %v405_v0 = vld [vmem:[%s1094_s8 + $0x300] sm:$0xff]  ;;  %v307_v3 = vld [vmem:[%s1291_s0 + $0x10] sm:$0xff]  ;;  %s296_s8 = scalar_lea.vmem %s1294_s3, %s1314_s11  ;;  %s677_s11 = scalar_lea.hbm %s1296_s5, %s800_s7 }
  0x62   : > { %550 = vmatprep.subr.mxu1 %v426_v21  ;;  %480 = vmatpush2.msra.mxu0 %v361_v22  ;;  %v305_v2 = vld [vmem:[%s1291_s0] sm:$0xff] }
  0x63   : > { %551 = vmatpush2.msra.mxu1 %v425_v23  ;;  %481 = vmatprep.subr.mxu0 %v360_v24 }
  0x64   : > { %552 = vmatprep.subr.mxu1 %v424_v25  ;;  %482 = vmatpush2.msra.mxu0 %v359_v26 }
  0x65   : > { %553 = vmatpush2.msra.mxu1 %v423_v27  ;;  %483 = vmatprep.subr.mxu0 %v358_v28 }
  0x66   : > { %554 = vmatprep.subr.mxu1 %v422_v29  ;;  %484 = vmatpush2.msra.mxu0 %v357_v30 }
  0x67   : > { %555 = vmatpush2.msra.mxu1 %v421_v31  ;;  %485 = vmatprep.subr.mxu0 %v356_v32 }
  0x68   : > { %556 = vmatprep.subr.mxu1 %v420_v33  ;;  %486 = vmatpush2.msra.mxu0 %v355_v34 }
  0x69   : > { %557 = vmatpush2.msra.mxu1 %v419_v35  ;;  %487 = vmatprep.subr.mxu0 %v354_v36 }
  0x6a   : > { %558 = vmatprep.subr.mxu1 %v418_v37  ;;  %488 = vmatpush2.msra.mxu0 %v353_v38 }
  0x6b   : > { %559 = vmatpush2.msra.mxu1 %v417_v39  ;;  %489 = vmatprep.subr.mxu0 %v352_v40 }
  0x6c   : > { %560 = vmatprep.subr.mxu1 %v416_v41  ;;  %490 = vmatpush2.msra.mxu0 %v351_v42 }
  0x6d   : > { %561 = vmatpush2.msra.mxu1 %v415_v43  ;;  %491 = vmatprep.subr.mxu0 %v350_v44  ;;  %v620_v43 = vlaneseq }
  0x6e   : > { %562 = vmatprep.subr.mxu1 %v414_v45  ;;  %492 = vmatpush2.msra.mxu0 %v349_v46 }
  0x6f   : > { %563 = vmatpush2.msra.mxu1 %v413_v47  ;;  %493 = vmatprep.subr.mxu0 %v348_v48  ;;  %v621_v45 = vshrl.u32 %v620_v43, 7  ;;  %v618_v47 = vld [vmem:[%s291_s23] sm:$0x3]  ;;  %s665_s23 = scalar_lea.sflag [#allocation4], %s1090_s25 }
  0x70   : > { %564 = vmatprep.subr.mxu1 %v412_v49  ;;  %494 = vmatpush2.msra.mxu0 %v347_v50  ;;  %v632_v49 = vld [vmem:[%s296_s8] sm:$0x3]  ;;  %s896_s8 = scalar_lea.vmem %s895_s22, 512 }
  0x71   : > { %565 = vmatpush2.msra.mxu1 %v411_v51  ;;  %495 = vmatprep.subr.mxu0 %v346_v52  ;;  %v622_v46 = vsub.s32 0, %v621_v45  ;;  %v626_v48 = vsub.s32 1, %v621_v45  ;;  %p898_p8 = scmp.lt.s32.totalorder %s896_s8, %s890_s26 }
  0x72   : > { %566 = vmatprep.subr.mxu1 %v410_v53  ;;  %496 = vmatpush2.msra.mxu0 %v345_v54 }
  0x73   : > { %567 = vmatpush2.msra.mxu1 %v409_v55  ;;  %497 = vmatprep.subr.mxu0 %v344_v56  ;;  %v623_v50 = vrot.slane %v618_v47, %v622_v46  ;;  %v637_v53 = vrot.slane %v632_v49, %v622_v46  ;;  %v627_v54 = vrot.slane %v618_v47, %v626_v48  ;;  %p899_p10 = por %p898_p8, %p897_p7 }
  0x74   : > { %568 = vmatprep.subr.mxu1 %v408_v57  ;;  %498 = vmatpush2.msra.mxu0 %v343_v58  ;;  %v641_v58 = vrot.slane %v632_v49, %v626_v48 }
  0x75   : > { %569 = vmatpush2.msra.mxu1 %v407_v59  ;;  %499 = vmatprep.subr.mxu0 %v342_v60  ;;  %p900_p1 = pnand %p899_p10, %p893_p5 }
  0x76   : > { %570 = vmatprep.subr.mxu1 %v406_v61  ;;  %500 = vmatpush2.msra.mxu0 %v341_v62 }
  0x77   : > { %501 = vmatprep.mubr.f32.mxu0 %v306_v63  ;;  %571 = vmatpush2.msra.mxu1 %v405_v0 }
  0x78   : > { %572 = vmatprep.mubr.f32.mxu1 %v308_v1  ;;  %502 = vmatmul.mubr.f32.vlgmr.msra.gmra.mxu0 %v305_v2 }
  0x79   : > { %573 = vmatmul.mubr.f32.vlgmr.msra.gmra.mxu1 %v307_v3 }
 0x138   : > { %v503_v4 = vpop.f32.mrf.mxu0 }
 0x139   : > { %v574_v5 = vpop.f32.mrf.mxu1 }
 0x13a   : > { %v575_v6 = vadd.f32 %v574_v5, %v503_v4  ;;  %v505_v7 = vpop.f32.mrf.mxu0  ;;  %v658_v4 = vld [vmem:[%s302_s16] sm:$0xff] }
 0x13b   : > { %v576_v8 = vpop.f32.mrf.mxu1 }
 0x13c   : > { %v579_v9 = vrot.slane %v575_v6, 4  ;;  %v577_v10 = vadd.f32 %v576_v8, %v505_v7 }
 0x13e   : > { %v580_v11 = vadd.f32 %v579_v9, %v575_v6  ;;  %v585_v12 = vrot.slane %v577_v10, 4 }
 0x140   : > { %v581_v13 = vrot.slane %v580_v11, 2  ;;  %v586_v14 = vadd.f32 %v585_v12, %v577_v10 }
 0x142   : > { %v582_v15 = vadd.f32 %v581_v13, %v580_v11  ;;  %v587_v16 = vrot.slane %v586_v14, 2 }
 0x144   : > { %v583_v17 = vrot.slane %v582_v15, 1  ;;  %v588_v18 = vadd.f32 %v587_v16, %v586_v14 }
 0x146   : > { %v584_v19 = vadd.f32 %v583_v17, %v582_v15  ;;  %v589_v20 = vrot.slane %v588_v18, 1 }
 0x148   : > { %v592_v21 = vmul.f32 0.125, %v584_v19  ;;  %v590_v22 = vadd.f32 %v589_v20, %v588_v18 }
 0x14a   : > { %v594_v23 = vsub.f32 %v575_v6, %v592_v21  ;;  %v593_v24 = vmul.f32 0.125, %v590_v22  ;;  %v659_v6 = vld [vmem:[%s302_s16 + $0x8] sm:$0xff] }
 0x14c   : > { %v596_v25 = vmul.f32 %v594_v23, %v594_v23  ;;  %v595_v26 = vsub.f32 %v577_v10, %v593_v24 }
 0x14e   : > { %v598_v27 = vrot.slane %v596_v25, 4  ;;  %v597_v28 = vmul.f32 %v595_v26, %v595_v26 }
 0x150   : > { %v599_v29 = vadd.f32 %v598_v27, %v596_v25  ;;  %v604_v30 = vrot.slane %v597_v28, 4 }
 0x152   : > { %v600_v31 = vrot.slane %v599_v29, 2  ;;  %v605_v32 = vadd.f32 %v604_v30, %v597_v28 }
 0x154   : > { %v601_v33 = vadd.f32 %v600_v31, %v599_v29  ;;  %v606_v34 = vrot.slane %v605_v32, 2 }
 0x156   : > { %v602_v35 = vrot.slane %v601_v33, 1  ;;  %v607_v36 = vadd.f32 %v606_v34, %v605_v32 }
 0x158   : > { %v603_v37 = vadd.f32 %v602_v35, %v601_v33  ;;  %v608_v38 = vrot.slane %v607_v36, 1 }
 0x15a   : > { %v610_v39 = vmul.f32 0.125, %v603_v37  ;;  %v609_v40 = vadd.f32 %v608_v38, %v607_v36 }
 0x15c   : > { %v612_v41 = vadd.f32 1e-05, %v610_v39  ;;  %v611_v42 = vmul.f32 0.125, %v609_v40 }
 0x15e   : > { %850 = vrsqrt.f32 %v612_v41  ;;  %v613_v44 = vadd.f32 1e-05, %v611_v42 }
 0x160   : > { %852 = vrsqrt.f32 %v613_v44 }
 0x16b   : > { %v851_v51 = vpop.eup %850 }
 0x16c   : > { %v616_v52 = vmul.f32 %v851_v51, %v594_v23 }
 0x16d   : > { %v853_v55 = vpop.eup %852 }
 0x16e   : > { %v630_v56 = vmul.f32 %v623_v50, %v616_v52  ;;  %v617_v57 = vmul.f32 %v853_v55, %v595_v26 }
 0x170   : > { %v644_v59 = vadd.f32 %v637_v53, %v630_v56  ;;  %v631_v60 = vmul.f32 %v627_v54, %v617_v57 }
 0x172   : > { %v792_v61 = vmul.f32 -1.442695, %v644_v59  ;;  %v645_v62 = vadd.f32 %v641_v58, %v631_v60 }
 0x174   : > { %854 = vpow2.f32 %v792_v61  ;;  %v793_v63 = vmul.f32 -1.442695, %v645_v62 }
 0x176   : > { %856 = vpow2.f32 %v793_v63 }
 0x181   : > { %v855_v0 = vpop.eup %854 }
 0x182   : > { %v652_v1 = vadd.f32 1.0, %v855_v0 }
 0x183   : > { %v857_v2 = vpop.eup %856 }
 0x184   : > { %858 = vrcp.f32 %v652_v1  ;;  %v653_v3 = vadd.f32 1.0, %v857_v2 }
 0x186   : > { %860 = vrcp.f32 %v653_v3 }
 0x191   : > { %v859_v5 = vpop.eup %858 }
 0x192   : > { %v660_v7 = vmul.f32 %v859_v5, %v658_v4 }
 0x193   : > { %v861_v8 = vpop.eup %860 }
 0x194   : > { %v661_v9 = vmul.f32 %v861_v8, %v659_v6  ;;  %662 = vst [vmem:[%s286_s9] sm:$0xff] %v660_v7 }
 0x196   : > { %663 = vst [vmem:[%s286_s9 + $0x8] sm:$0xff] %v661_v9 }
 0x197   : > { %903 = shalt.err (!%p900_p1)
}
 0x198   : > { %s904_s29 = scalar_lea.hbm %s677_s11, 256  ;;  %s908_s14 = scalar_lea.hbm %s1296_s5, 512 }
 0x199   : > { %p905_p3 = scmp.ne.s32.totalorder %s677_s11, %s904_s29  ;;  %p909_p2 = scmp.lt.s32.totalorder %s677_s11, %s1296_s5 }
 0x19a   : > { %p910_p6 = scmp.lt.s32.totalorder %s908_s14, %s904_s29 }
 0x19b   : > { %p906_p9 = pnand %p905_p3, %p1306_p13 }
 0x19c   : > { %p911_p11 = por %p910_p6, %p909_p2 }
 0x19d   : > { %p907_p0 = pneg %p906_p9 }
 0x19f   : > { %p912_p12 = pnand %p911_p11, %p907_p0 }
 0x1a1   : > { %915 = shalt.err (!%p912_p12)
}
 0x1a2   : > { %803 = dma.vmem_to_hbm [thread:$0]  (%p1306_p13), %s680_s10, 256, %s677_s11, %s665_s23  }
 0x1a3 PF: > { %s691_s7 = sand.u32 1, %s942_s18   ;;  %p1307_p4 = scmp.ne.s32.totalorder %s1302_s6, 0 }
 0x1a4   : > { %p1308_p5 = scmp.ge.s32.totalorder %s954_s21, 2  ;;  %s692_s9 = scalar_lea.sflag [#allocation4], %s691_s7 }
 0x1a6   : > { %p810_p7 = pnand %p1308_p5, %p1307_p4 }
 0x1a8   : > { %p811_p8 = pneg %p810_p7 }
 0x1aa   : > { %937 = dma.done.wait (%p811_p8), %s692_s9, 256  }
 0x1ab   : > { %939 = vsyncadd (%p811_p8), %s692_s9, 4294967040  ;;  %p18_p10 = scmp.ge.s32.totalorder %s1016_s24, 4   ;;  %s1309_s18 = smov %s946_s19 }
 0x1ac   : > { %s1310_s19 = smov %s950_s20  ;;  %s1311_s20 = smov %s1028_s27 }
 0x1ad   : > { %s1312_s21 = smov %s1016_s24  ;;  %20 = sbr.rel (!%p18_p10) target bundleno = 5 (0x5), region = 94 }
 0x1b2   :  { %697 = vsyncpa [#allocation3], 1 }
 0x1b3   :  { %699 = vsyncpa [#allocation3 + $0x1], 1 }
 0x1b4   :  { %700 = vsyncpa [#allocation4], 1 }
 0x1b5   :  { %702 = vsyncpa [#allocation4 + $0x1], 1 }

// kernel: soft_dbow.2
= control target key start
LH: loop header
LB: loop body
LE: loop exit
PB: predicated region body
PF: predicated region fallthrough
CT: control target
= control target key end

     0   :  { %10 = vsyncpa [#allocation3], 0  ;;  %s805_s0 = inlined_call_operand.hbm [shape: f32[32,64], index: 0, kind: input, shape index: {}]   ;;  %s806_s1 = inlined_call_operand.hbm [shape: f32[64,128], index: 1, kind: input, shape index: {}]   ;;  %s807_s2 = inlined_call_operand.vmem [shape: f32[1,128], index: 2, kind: input, shape index: {}]   ;;  %s808_s3 = inlined_call_operand.vmem [shape: f32[1,128], index: 3, kind: input, shape index: {}]   ;;  %s809_s4 = inlined_call_operand.hbm [shape: f32[128,512], index: 4, kind: input, shape index: {}]   ;;  %s810_s5 = inlined_call_operand.vmem [shape: f32[8,512], index: 5, kind: output, shape index: {}]  }
   0x1   :  { %11 = vsyncpa [#allocation5], 0  ;;  %s730_s18 = smov [#allocation4]   ;;  %s731_s20 = smov [#allocation2]  }
   0x2   :  { %s29_s19 = sshll.u32 %s730_s18, 4  ;;  %s17_s21 = sshll.u32 %s731_s20, 4  ;;  %s30_s19 = int_to_ptr.vmem [resolvable:$true] %s29_s19  ;;  %s18_s21 = int_to_ptr.vmem [resolvable:$true] %s17_s21 }
   0x3   :  { %s674_s22 = scalar_lea.vmem %s30_s19, 1024  ;;  %p679_p1 = scmp.lt.s32.totalorder %s30_s19, %s30_s19 }
   0x4   :  { %p675_p0 = scmp.ne.s32.totalorder %s30_s19, %s674_s22  ;;  %p680_p2 = scmp.lt.s32.totalorder %s674_s22, %s674_s22 }
   0x6   :  { %p681_p3 = por %p680_p2, %p679_p1 }
   0x8   :  { %p682_p4 = pnand %p681_p3, %p675_p0 }
   0xa   :  { %685 = shalt.err (!%p682_p4)
}
   0xb   :  { %s732_s23 = smov 128   ;;  %s733_s24 = smov 8  }
   0xc   :  { %35 = dma.hbm_to_vmem [thread:$0]  %s806_s1, 1024, %s30_s19, [#allocation5], %s732_s23, %s732_s23, %s733_s24  }
   0xd   :  { %s694_s27 = scalar_lea.vmem %s18_s21, 512  ;;  %p699_p6 = scmp.lt.s32.totalorder %s18_s21, %s18_s21 }
   0xe   :  { %p695_p5 = scmp.ne.s32.totalorder %s18_s21, %s694_s27  ;;  %p700_p7 = scmp.lt.s32.totalorder %s694_s27, %s694_s27 }
  0x10   :  { %p701_p8 = por %p700_p7, %p699_p6 }
  0x12   :  { %p702_p9 = pnand %p701_p8, %p695_p5 }
  0x14   :  { %705 = shalt.err (!%p702_p9)
}
  0x15   :  { %23 = dma.hbm_to_vmem [thread:$0]  %s805_s0, 512, %s18_s21, [#allocation3], %s732_s23, %s732_s23, %s733_s24  }
  0x16   :  { %s734_s30 = smov [#allocation6]  }
  0x17   :  { %s45_s6 = sshll.u32 %s734_s30, 4  ;;  %s46_s6 = int_to_ptr.vmem [resolvable:$true] %s45_s6 }
  0x18   :  { %s714_s7 = scalar_lea.vmem %s46_s6, 8192  ;;  %p719_p11 = scmp.lt.s32.totalorder %s46_s6, %s46_s6 }
  0x19   :  { %p715_p10 = scmp.ne.s32.totalorder %s46_s6, %s714_s7  ;;  %p720_p12 = scmp.lt.s32.totalorder %s714_s7, %s714_s7 }
  0x1b   :  { %p721_p13 = por %p720_p12, %p719_p11 }
  0x1d   :  { %p722_p0 = pnand %p721_p13, %p715_p10 }
  0x1f   :  { %725 = shalt.err (!%p722_p0)
}
  0x20   :  { %s735_s1 = smov 512   ;;  %s736_s8 = smov 32  }
  0x21   :  { %51 = dma.hbm_to_vmem [thread:$0]  %s809_s4, 8192, %s46_s6, [#allocation5], %s735_s1, %s735_s1, %s736_s8  }
  0x22   :  { %726 = dma.done.wait [#allocation3], 512  }
  0x23   :  { %727 = vsyncadd [#allocation3], 4294966784 }
  0x24   :  { %728 = dma.done.wait [#allocation5], 9216  }
  0x25   :  { %729 = vsyncadd [#allocation5], 4294958080  ;;  %v72_v0 = vld [vmem:[#allocation4 + $0x38] sm:$0xff]  ;;  %v71_v1 = vld [vmem:[#allocation4 + $0x30] sm:$0xff]  ;;  %vm73_vm0 = vcmask 523264   ;;  %vm738_vm1 = vmmov 0  }
  0x26   :  { %602 = vmatprep.subr.mxu0 %v72_v0  ;;  %v70_v2 = vld [vmem:[#allocation4 + $0x28] sm:$0xff]  ;;  %v61_v3 = vld [vmem:[#allocation2] sm:$0xff]  ;;  %v68_v5 = vld [vmem:[#allocation4 + $0x18] sm:$0xff]  ;;  %vm275_vm5 = vcmask 261120  }
  0x27   :  { %603 = vmatpush3.msra.mxu0 %v72_v0  ;;  %618 = vmatprep.mubr.msk.f32.mxu0 %vm73_vm0, %v61_v3  ;;  %v69_v4 = vld [vmem:[#allocation4 + $0x20] sm:$0xff]  ;;  %v67_v6 = vld [vmem:[#allocation4 + $0x10] sm:$0xff]  ;;  %v66_v7 = vld [vmem:[#allocation4 + $0x8] sm:$0xff] }
  0x28   :  { %604 = vmatprep.subr.mxu0 %v71_v1  ;;  %v65_v8 = vld [vmem:[#allocation4] sm:$0xff]  ;;  %v62_v9 = vld [vmem:[#allocation2 + $0x8] sm:$0xff]  ;;  %v63_v10 = vld [vmem:[#allocation2 + $0x10] sm:$0xff] }
  0x29   :  { %605 = vmatpush3.msra.mxu0 %v71_v1  ;;  %v64_v11 = vld [vmem:[#allocation2 + $0x18] sm:$0xff]  ;;  %v582_v46 = vld [vmem:[%s807_s2] ss:$0 sm:$0xff] }
  0x2a   :  { %606 = vmatprep.subr.mxu0 %v70_v2  ;;  %v583_v51 = vld [vmem:[%s808_s3] ss:$0 sm:$0xff] }
  0x2b   :  { %607 = vmatpush3.msra.mxu0 %v70_v2 }
  0x2c   :  { %608 = vmatprep.subr.mxu0 %v69_v4 }
  0x2d   :  { %609 = vmatpush3.msra.mxu0 %v69_v4 }
  0x2e   :  { %610 = vmatprep.subr.mxu0 %v68_v5 }
  0x2f   :  { %611 = vmatpush3.msra.mxu0 %v68_v5 }
  0x30   :  { %612 = vmatprep.subr.mxu0 %v67_v6 }
  0x31   :  { %613 = vmatpush3.msra.mxu0 %v67_v6 }
  0x32   :  { %614 = vmatprep.subr.mxu0 %v66_v7 }
  0x33   :  { %615 = vmatpush3.msra.mxu0 %v66_v7 }
  0x34   :  { %616 = vmatprep.subr.mxu0 %v65_v8 }
  0x35   :  { %617 = vmatpush3.msra.mxu0 %v65_v8 }
  0x36   :  { %619 = vmatmul.mubr.msk.f32.vlgmr.msra.gmra.mxu0 %vm73_vm0, %v62_v9 }
  0x37   :  { %621 = vmatprep.mubr.msk.f32.mxu0 %vm73_vm0, %v63_v10 }
  0x3a   :  { %622 = vmatmul.mubr.msk.f32.gmra.mxu0 %vm73_vm0, %v64_v11 }
  0xf6   :  { %v620_v12 = vpop.f32.mrf.mxu0 }
  0xf8   :  { %v152_v13 = vpop.f32.mrf.mxu0 }
  0xf9   :  { %v171_v15 = vadd.f32 %v620_v12, %v152_v13 }
  0xfa   :  { %v623_v14 = vpop.f32.mrf.mxu0 }
  0xfc   :  { %v162_v16 = vpop.f32.mrf.mxu0 }
  0xfd   :  { %v172_v17 = vadd.f32 %v171_v15, %v162_v16 }
  0xff   :  { %v173_v18 = vadd.f32 %v623_v14, %v172_v17 }
 0x101   :  { %v174_v19 = vrot.slane %v173_v18, 4 }
 0x103   :  { %v175_v20 = vadd.f32 %v174_v19, %v173_v18 }
 0x105   :  { %v176_v21 = vrot.slane %v175_v20, 2 }
 0x107   :  { %v177_v22 = vadd.f32 %v176_v21, %v175_v20 }
 0x109   :  { %v178_v23 = vrot.slane %v177_v22, 1 }
 0x10b   :  { %v179_v24 = vadd.f32 %v178_v23, %v177_v22 }
 0x10d   :  { %v181_v25 = vmul.f32 0.03125, %v179_v24 }
 0x10f   :  { %v182_v26 = vsub.f32 %v152_v13, %v181_v25  ;;  %v183_v27 = vsub.f32 %v620_v12, %v181_v25  ;;  %v184_v28 = vsub.f32 %v162_v16, %v181_v25  ;;  %v185_v29 = vsub.f32 %v623_v14, %v181_v25 }
 0x110   :  { %v737_v12 = vmov 0.0   ;;  %v264_v14 = vlaneseq }
 0x111   :  { %v186_v30 = vmul.f32 %v182_v26, %v182_v26  ;;  %v187_v31 = vmul.f32 %v183_v27, %v183_v27  ;;  %v188_v32 = vmul.f32 %v184_v28, %v184_v28  ;;  %v189_v34 = vmul.f32 %v185_v29, %v185_v29  ;;  %624 = vmatprep.subr.mxu1 %v737_v12 }
 0x112   :  { %561 = vmatprep.mubr.f32.mxu0 %v737_v12  ;;  %632 = vmatprep.mubr.msk.f32.mxu1 %vm738_vm1, %v737_v12  ;;  %v267_v17 = vshrl.u32 %v264_v14, 7  ;;  %v265_v21 = vand.u32 127, %v264_v14  ;;  %v384_v14 = vld [vmem:[#allocation6 + $0xb0] sm:$0xff] }
 0x113   :  { %v190_v33 = vadd.f32 %v187_v31, %v186_v30 }
 0x114   :  { %v270_v19 = vadd.s32 1, %v267_v17  ;;  %v268_v22 = vmul.u32 4, %v267_v17  ;;  %v378_v17 = vld [vmem:[#allocation6 + $0x80] sm:$0xff] }
 0x115   :  { %v191_v35 = vadd.f32 %v190_v33, %v188_v32 }
 0x116   :  { %v271_v23 = vmul.u32 4, %v270_v19  ;;  %vm269_vm2 = vcmp.ge.s32.totalorder %v265_v21, %v268_v22  ;;  %v375_v19 = vld [vmem:[#allocation6 + $0x68] sm:$0xff]  ;;  %v376_v22 = vld [vmem:[#allocation6 + $0x70] sm:$0xff] }
 0x117   :  { %v192_v36 = vadd.f32 %v191_v35, %v189_v34  ;;  %v423_v35 = vld [vmem:[#allocation6 + $0x1e8] sm:$0xff] }
 0x118   :  { %vm272_vm3 = vcmp.lt.s32.totalorder %v265_v21, %v271_v23  ;;  %v374_v21 = vld [vmem:[#allocation6 + $0x60] sm:$0xff]  ;;  %v371_v23 = vld [vmem:[#allocation6 + $0x48] sm:$0xff] }
 0x119   :  { %v193_v37 = vrot.slane %v192_v36, 4  ;;  %vm273_vm4 = vmand %vm269_vm2, %vm272_vm3 }
 0x11a   :  { %v274_v31 = vsel %vm273_vm4, 1.0, %v737_v12 }
 0x11b   :  { %v194_v38 = vadd.f32 %v193_v37, %v192_v36  ;;  %v425_v36 = vld [vmem:[#allocation6 + $0x1f8] sm:$0xff]  ;;  %v422_v37 = vld [vmem:[#allocation6 + $0x1e0] sm:$0xff] }
 0x11c   :  { %497 = vmatprep.subr.mxu0 %v425_v36 }
 0x11d   :  { %v195_v39 = vrot.slane %v194_v38, 2 }
 0x11f   :  { %v196_v40 = vadd.f32 %v195_v39, %v194_v38  ;;  %v424_v38 = vld [vmem:[#allocation6 + $0x1f0] sm:$0xff]  ;;  %v419_v39 = vld [vmem:[#allocation6 + $0x1c8] sm:$0xff] }
 0x120   :  { %498 = vmatpush1.msra.mxu0 %v424_v38 }
 0x121   :  { %v197_v41 = vrot.slane %v196_v40, 1 }
 0x123   :  { %v198_v42 = vadd.f32 %v197_v41, %v196_v40  ;;  %v421_v40 = vld [vmem:[#allocation6 + $0x1d8] sm:$0xff]  ;;  %v418_v41 = vld [vmem:[#allocation6 + $0x1c0] sm:$0xff] }
 0x124   :  { %499 = vmatprep.subr.mxu0 %v421_v40 }
 0x125   :  { %v199_v43 = vmul.f32 0.03125, %v198_v42  ;;  %v420_v42 = vld [vmem:[#allocation6 + $0x1d0] sm:$0xff] }
 0x126   :  { %500 = vmatpush1.msra.mxu0 %v420_v42 }
 0x127   :  { %v200_v44 = vadd.f32 1e-05, %v199_v43  ;;  %v415_v43 = vld [vmem:[#allocation6 + $0x1a8] sm:$0xff] }
 0x129   :  { %644 = vrsqrt.f32 %v200_v44  ;;  %v417_v44 = vld [vmem:[#allocation6 + $0x1b8] sm:$0xff] }
 0x12a   :  { %501 = vmatprep.subr.mxu0 %v417_v44 }
 0x136   :  { %v645_v45 = vpop.eup %644 }
 0x137   :  { %v204_v47 = vmul.f32 %v645_v45, %v184_v28  ;;  %v205_v48 = vmul.f32 %v645_v45, %v185_v29  ;;  %v203_v49 = vmul.f32 %v645_v45, %v183_v27  ;;  %v202_v50 = vmul.f32 %v645_v45, %v182_v26  ;;  %v414_v45 = vld [vmem:[#allocation6 + $0x1a0] sm:$0xff] }
 0x139   :  { %v216_v52 = vmul.f32 %v582_v46, %v205_v48  ;;  %v214_v53 = vmul.f32 %v582_v46, %v203_v49  ;;  %v215_v56 = vmul.f32 %v582_v46, %v204_v47  ;;  %v213_v57 = vmul.f32 %v582_v46, %v202_v50  ;;  %v416_v46 = vld [vmem:[#allocation6 + $0x1b0] sm:$0xff]  ;;  %v411_v47 = vld [vmem:[#allocation6 + $0x188] sm:$0xff]  ;;  %v413_v48 = vld [vmem:[#allocation6 + $0x198] sm:$0xff] }
 0x13a   :  { %502 = vmatpush1.msra.mxu0 %v416_v46  ;;  %v410_v49 = vld [vmem:[#allocation6 + $0x180] sm:$0xff]  ;;  %v412_v50 = vld [vmem:[#allocation6 + $0x190] sm:$0xff] }
 0x13b   :  { %v227_v54 = vadd.f32 %v583_v51, %v216_v52  ;;  %v225_v55 = vadd.f32 %v583_v51, %v214_v53  ;;  %v226_v58 = vadd.f32 %v583_v51, %v215_v56  ;;  %v224_v59 = vadd.f32 %v583_v51, %v213_v57  ;;  %503 = vmatprep.subr.mxu0 %v413_v48  ;;  %v407_v51 = vld [vmem:[#allocation6 + $0x168] sm:$0xff]  ;;  %v409_v52 = vld [vmem:[#allocation6 + $0x178] sm:$0xff]  ;;  %v406_v53 = vld [vmem:[#allocation6 + $0x160] sm:$0xff] }
 0x13c   :  { %504 = vmatpush1.msra.mxu0 %v412_v50  ;;  %v405_v56 = vld [vmem:[#allocation6 + $0x158] sm:$0xff]  ;;  %v402_v57 = vld [vmem:[#allocation6 + $0x140] sm:$0xff] }
 0x13d   :  { %234 = vmax.xlane.f32.xlu0 %v227_v54  ;;  %230 = vmax.xlane.f32.xlu1 %v225_v55 }
 0x13e   :  { %505 = vmatprep.subr.mxu0 %v409_v52 }
 0x141   :  { %232 = vmax.xlane.f32.xlu0 %v226_v58  ;;  %228 = vmax.xlane.f32.xlu1 %v224_v59 }
 0x1c6   :  { %v235_v60 = vpop.xlane.xlu0 %234  ;;  %v231_v61 = vpop.xlane.xlu1 %230 }
 0x1c7   :  { %v239_v62 = vsub.f32 %v227_v54, %v235_v60  ;;  %v237_v63 = vsub.f32 %v225_v55, %v231_v61  ;;  %v408_v54 = vld [vmem:[#allocation6 + $0x170] sm:$0xff]  ;;  %v403_v55 = vld [vmem:[#allocation6 + $0x148] sm:$0xff]  ;;  %v401_v60 = vld [vmem:[#allocation6 + $0x138] sm:$0xff] }
 0x1c8   :  { %506 = vmatpush1.msra.mxu0 %v408_v54  ;;  %v398_v61 = vld [vmem:[#allocation6 + $0x120] sm:$0xff] }
 0x1c9   :  { %v246_v0 = vmul.f32 1.442695, %v239_v62  ;;  %v242_v1 = vmul.f32 1.442695, %v237_v63  ;;  %507 = vmatprep.subr.mxu0 %v405_v56  ;;  %v400_v62 = vld [vmem:[#allocation6 + $0x130] sm:$0xff]  ;;  %v395_v63 = vld [vmem:[#allocation6 + $0x108] sm:$0xff] }
 0x1ca   :  { %v233_v2 = vpop.xlane.xlu0 %232  ;;  %v229_v3 = vpop.xlane.xlu1 %228 }
 0x1cb   :  { %646 = vpow2.f32 %v246_v0  ;;  %v238_v4 = vsub.f32 %v226_v58, %v233_v2  ;;  %v236_v5 = vsub.f32 %v224_v59, %v229_v3  ;;  %v404_v58 = vld [vmem:[#allocation6 + $0x150] sm:$0xff]  ;;  %v399_v59 = vld [vmem:[#allocation6 + $0x128] sm:$0xff]  ;;  %v397_v0 = vld [vmem:[#allocation6 + $0x118] sm:$0xff] }
 0x1cc   :  { %648 = vpow2.f32 %v242_v1  ;;  %508 = vmatpush1.msra.mxu0 %v404_v58  ;;  %v394_v1 = vld [vmem:[#allocation6 + $0x100] sm:$0xff]  ;;  %v396_v2 = vld [vmem:[#allocation6 + $0x110] sm:$0xff]  ;;  %v391_v3 = vld [vmem:[#allocation6 + $0xe8] sm:$0xff] }
 0x1cd   :  { %v244_v6 = vmul.f32 1.442695, %v238_v4  ;;  %v240_v7 = vmul.f32 1.442695, %v236_v5  ;;  %509 = vmatprep.subr.mxu0 %v401_v60  ;;  %v393_v4 = vld [vmem:[#allocation6 + $0xf8] sm:$0xff]  ;;  %v390_v5 = vld [vmem:[#allocation6 + $0xe0] sm:$0xff] }
 0x1ce   :  { %510 = vmatpush1.msra.mxu0 %v400_v62 }
 0x1cf   :  { %650 = vpow2.f32 %v244_v6  ;;  %511 = vmatprep.subr.mxu0 %v397_v0  ;;  %v392_v6 = vld [vmem:[#allocation6 + $0xf0] sm:$0xff] }
 0x1d0   :  { %652 = vpow2.f32 %v240_v7  ;;  %512 = vmatpush1.msra.mxu0 %v396_v2  ;;  %v387_v7 = vld [vmem:[#allocation6 + $0xc8] sm:$0xff] }
 0x1d1   :  { %513 = vmatprep.subr.mxu0 %v393_v4 }
 0x1d2   :  { %514 = vmatpush1.msra.mxu0 %v392_v6 }
 0x1d8   :  { %v647_v8 = vpop.eup %646 }
 0x1d9   :  { %254 = vadd.xlane.f32.xlu0 %v647_v8  ;;  %v649_v9 = vpop.eup %648 }
 0x1dc   :  { %v651_v10 = vpop.eup %650 }
 0x1dd   :  { %250 = vadd.xlane.f32.xlu0 %v649_v9  ;;  %252 = vadd.xlane.f32.xlu1 %v651_v10  ;;  %v653_v11 = vpop.eup %652 }
 0x1e1   :  { %248 = vadd.xlane.f32.xlu1 %v653_v11 }
 0x262   :  { %v255_v13 = vpop.xlane.xlu0 %254 }
 0x263   :  { %654 = vrcp.f32 %v255_v13  ;;  %v382_v13 = vld [vmem:[#allocation6 + $0xa0] sm:$0xff] }
 0x266   :  { %v251_v15 = vpop.xlane.xlu0 %250  ;;  %v253_v16 = vpop.xlane.xlu1 %252 }
 0x267   :  { %656 = vrcp.f32 %v251_v15  ;;  %v379_v15 = vld [vmem:[#allocation6 + $0x88] sm:$0xff] }
 0x268   :  { %658 = vrcp.f32 %v253_v16  ;;  %v381_v16 = vld [vmem:[#allocation6 + $0x98] sm:$0xff] }
 0x26a   :  { %v249_v18 = vpop.xlane.xlu1 %248 }
 0x26b   :  { %660 = vrcp.f32 %v249_v18  ;;  %v380_v18 = vld [vmem:[#allocation6 + $0x90] sm:$0xff] }
 0x270   :  { %v655_v20 = vpop.eup %654 }
 0x271   :  { %v263_v24 = vmul.f32 %v655_v20, %v647_v8  ;;  %v389_v8 = vld [vmem:[#allocation6 + $0xd8] sm:$0xff] }
 0x272   :  { %515 = vmatprep.subr.mxu0 %v389_v8  ;;  %v377_v20 = vld [vmem:[#allocation6 + $0x78] sm:$0xff] }
 0x273   :  { %625 = vmatpush3.msra.mxu1 %v263_v24  ;;  %v373_v24 = vld [vmem:[#allocation6 + $0x58] sm:$0xff] }
 0x274   :  { %v657_v25 = vpop.eup %656  ;;  %626 = vmatprep.subr.mxu1 %v737_v12 }
 0x275   :  { %v659_v26 = vpop.eup %658  ;;  %v259_v29 = vmul.f32 %v657_v25, %v649_v9  ;;  %v386_v9 = vld [vmem:[#allocation6 + $0xc0] sm:$0xff] }
 0x276   :  { %v261_v27 = vmul.f32 %v659_v26, %v651_v10  ;;  %v388_v10 = vld [vmem:[#allocation6 + $0xd0] sm:$0xff]  ;;  %v370_v25 = vld [vmem:[#allocation6 + $0x40] sm:$0xff] }
 0x277   :  { %516 = vmatpush1.msra.mxu0 %v388_v10  ;;  %v372_v26 = vld [vmem:[#allocation6 + $0x50] sm:$0xff] }
 0x278   :  { %v661_v28 = vpop.eup %660  ;;  %627 = vmatpush3.msra.mxu1 %v261_v27  ;;  %v367_v27 = vld [vmem:[#allocation6 + $0x28] sm:$0xff] }
 0x279   :  { %628 = vmatprep.subr.mxu1 %v737_v12  ;;  %v257_v30 = vmul.f32 %v661_v28, %v653_v11  ;;  %v383_v11 = vld [vmem:[#allocation6 + $0xa8] sm:$0xff]  ;;  %v369_v28 = vld [vmem:[#allocation6 + $0x38] sm:$0xff] }
 0x27a   :  { %629 = vmatpush3.msra.mxu1 %v259_v29  ;;  %v366_v29 = vld [vmem:[#allocation6 + $0x20] sm:$0xff] }
 0x27b   :  { %630 = vmatprep.subr.mxu1 %v737_v12 }
 0x27c   :  { %631 = vmatpush3.msra.mxu1 %v257_v30  ;;  %v368_v30 = vld [vmem:[#allocation6 + $0x30] sm:$0xff] }
 0x27d   :  { %633 = vmatmul.mubr.msk.f32.vlgmr.msra.gmra.mxu1 %vm275_vm5, %v274_v31  ;;  %426 = vmatprep.subr.mxu1 %v423_v35  ;;  %v363_v31 = vld [vmem:[#allocation6 + $0x8] sm:$0xff]  ;;  %v364_v35 = vld [vmem:[#allocation6 + $0x10] sm:$0xff] }
 0x27e   :  { %490 = vmatprep.mubr.f32.mxu1 %v737_v12  ;;  %427 = vmatpush1.msra.mxu1 %v422_v37  ;;  %v385_v12 = vld [vmem:[#allocation6 + $0xb8] sm:$0xff] }
 0x27f   :  { %428 = vmatprep.subr.mxu1 %v419_v39  ;;  %517 = vmatprep.subr.mxu0 %v385_v12 }
 0x280   :  { %429 = vmatpush1.msra.mxu1 %v418_v41  ;;  %518 = vmatpush1.msra.mxu0 %v384_v14 }
 0x281   :  { %430 = vmatprep.subr.mxu1 %v415_v43  ;;  %519 = vmatprep.subr.mxu0 %v381_v16 }
 0x282   :  { %431 = vmatpush1.msra.mxu1 %v414_v45  ;;  %520 = vmatpush1.msra.mxu0 %v380_v18 }
 0x283   :  { %432 = vmatprep.subr.mxu1 %v411_v47  ;;  %521 = vmatprep.subr.mxu0 %v377_v20 }
 0x284   :  { %433 = vmatpush1.msra.mxu1 %v410_v49  ;;  %522 = vmatpush1.msra.mxu0 %v376_v22 }
 0x285   :  { %434 = vmatprep.subr.mxu1 %v407_v51  ;;  %523 = vmatprep.subr.mxu0 %v373_v24 }
 0x286   :  { %435 = vmatpush1.msra.mxu1 %v406_v53  ;;  %524 = vmatpush1.msra.mxu0 %v372_v26 }
 0x287   :  { %436 = vmatprep.subr.mxu1 %v403_v55  ;;  %525 = vmatprep.subr.mxu0 %v369_v28 }
 0x288   :  { %437 = vmatpush1.msra.mxu1 %v402_v57  ;;  %526 = vmatpush1.msra.mxu0 %v368_v30 }
 0x289   :  { %438 = vmatprep.subr.mxu1 %v399_v59 }
 0x28a   :  { %439 = vmatpush1.msra.mxu1 %v398_v61 }
 0x28b   :  { %440 = vmatprep.subr.mxu1 %v395_v63 }
 0x28c   :  { %441 = vmatpush1.msra.mxu1 %v394_v1 }
 0x28d   :  { %442 = vmatprep.subr.mxu1 %v391_v3 }
 0x28e   :  { %443 = vmatpush1.msra.mxu1 %v390_v5 }
 0x28f   :  { %444 = vmatprep.subr.mxu1 %v387_v7 }
 0x290   :  { %445 = vmatpush1.msra.mxu1 %v386_v9 }
 0x291   :  { %446 = vmatprep.subr.mxu1 %v383_v11 }
 0x292   :  { %447 = vmatpush1.msra.mxu1 %v382_v13 }
 0x293   :  { %448 = vmatprep.subr.mxu1 %v379_v15 }
 0x294   :  { %449 = vmatpush1.msra.mxu1 %v378_v17 }
 0x295   :  { %450 = vmatprep.subr.mxu1 %v375_v19 }
 0x296   :  { %451 = vmatpush1.msra.mxu1 %v374_v21 }
 0x297   :  { %452 = vmatprep.subr.mxu1 %v371_v23 }
 0x298   :  { %453 = vmatpush1.msra.mxu1 %v370_v25 }
 0x299   :  { %454 = vmatprep.subr.mxu1 %v367_v27 }
 0x29a   :  { %455 = vmatpush1.msra.mxu1 %v366_v29 }
 0x29b   :  { %456 = vmatprep.subr.mxu1 %v363_v31 }
 0x33d   :  { %v788_v32 = vpop.f32.mrf.mxu1 }
 0x33e   :  { %v349_v33 = vmul.f32 %v788_v32, %v788_v32 }
 0x33f   :  { %v634_v34 = vpop.f32.mrf.mxu1 }
 0x340   :  { %350 = vadd.xlane.f32.xlu0 %v349_v33  ;;  %v365_v33 = vld [vmem:[#allocation6 + $0x18] sm:$0xff]  ;;  %v362_v34 = vld [vmem:[#allocation6] sm:$0xff] }
 0x341   :  { %527 = vmatprep.subr.mxu0 %v365_v33  ;;  %457 = vmatpush1.msra.mxu1 %v362_v34 }
 0x342   :  { %528 = vmatpush1.msra.mxu0 %v364_v35 }
 0x3c9   :  { %v351_v36 = vpop.xlane.xlu0 %350 }
 0x3ca   :  { %662 = vrsqrt.f32 %v351_v36  ;;  %vm354_vm6 = vcmp.eq.f32.partialorder %v351_v36, inf  ;;  %v357_v39 = vand.u32 2147483648, %v351_v36  ;;  %vm356_vm7 = vcmp.eq.f32.partialorder %v351_v36, 0.0 }
 0x3d7   :  { %v663_v37 = vpop.eup %662 }
 0x3d8   :  { %v353_v38 = vmul.f32 %v663_v37, %v351_v36 }
 0x3da   :  { %v355_v40 = vsel %vm354_vm6, %v351_v36, %v353_v38 }
 0x3db   :  { %v358_v41 = vsel %vm356_vm7, %v357_v39, %v355_v40 }
 0x3dc   :  { %v359_v42 = vmax.f32 %v358_v41, 1e-12 }
 0x3de   :  { %664 = vrcp.f32 %v359_v42 }
 0x3eb   :  { %v665_v43 = vpop.eup %664 }
 0x3ec   :  { %v361_v44 = vmul.f32 %v665_v43, %v788_v32 }
 0x3ee   :  { %491 = vmatmul.mubr.f32.vlgmr.msra.gmra.mxu1 %v361_v44  ;;  %562 = vmatmul.mubr.f32.vlgmr.msra.gmra.mxu0 %v361_v44 }
 0x4ae   :  { %v492_v45 = vpop.f32.mrf.mxu1  ;;  %v563_v46 = vpop.f32.mrf.mxu0 }
 0x4af   :  { %568 = vst [vmem:[%s810_s5] sm:$0xff] %v492_v45  ;;  %570 = vst [vmem:[%s810_s5 + $0x10] sm:$0xff] %v563_v46 }
 0x4b0   :  { %v494_v47 = vpop.f32.mrf.mxu1  ;;  %v565_v48 = vpop.f32.mrf.mxu0 }
 0x4b1   :  { %569 = vst [vmem:[%s810_s5 + $0x8] sm:$0xff] %v494_v47  ;;  %571 = vst [vmem:[%s810_s5 + $0x18] sm:$0xff] %v565_v48 }
 0x4b2   :  { %576 = vsyncpa [#allocation3], 1 }
 0x4b3   :  { %577 = vsyncpa [#allocation5], 1 }

</bundles_post_ra>
